<compile_context>
chip_gen: v7x
topology: tpu7x:2x2x1
jax: 0.10.0
libtpu: 0.0.40
codegen_flags: <defaults>
</compile_context>

<pallas_src>
import jax
import jax.numpy as jnp
from jax import lax
from jax.experimental import pallas as pl
from jax.experimental.pallas import tpu as pltpu


# ----------------------------------------------------------------------------
# Fused Pallas kernel: all LSTM layers + final linear, single invocation
# ----------------------------------------------------------------------------
def _make_fused_kernel(num_layers, seq_len, batch_p, hidden_dim, embed_dim):
    L, S, Bp, H = num_layers, seq_len, batch_p, hidden_dim

    def kernel(*refs):
        # inputs : x2d, (wih_t, whh_t, bias) * L, lin_w, lin_b, h0, c0
        # outputs: logits
        # scratch: gx (S*Bp, 4H) hoisted input-projection slab
        #          xbuf (S*Bp, H) inter-layer activation slab
        x_ref = refs[0]                                   # (S*Bp, E)
        layer_refs = refs[1:1 + 3 * L]
        lin_w_ref, lin_b_ref, h0_ref, c0_ref = refs[1 + 3 * L:5 + 3 * L]
        out_ref = refs[5 + 3 * L]                         # (Bp, 1)
        gx_ref = refs[6 + 3 * L]                          # (S*Bp, 4H)
        xbuf_ref = refs[7 + 3 * L]                        # (S*Bp, H)

        def run_layer(l, in_ref, write_seq):
            wih_ref = layer_refs[3 * l]                   # (E_in, 4H)
            whh_ref = layer_refs[3 * l + 1]               # (H, 4H)
            b_ref = layer_refs[3 * l + 2]                 # (1, 4H)

            # Hoisted input projection: one big MXU dot off the serial
            # recurrence path; bias broadcast happens once per layer.
            gx_ref[...] = (jnp.dot(in_ref[...], wih_ref[...],
                                   preferred_element_type=jnp.float32)
                           + b_ref[...])

            def step(t, carry):
                h, c = carry
                row = pl.multiple_of(t * Bp, Bp)
                # Only the recurrent dot remains on the t -> t+1 chain.
                gates = gx_ref[pl.ds(row, Bp), :] + jnp.dot(
                    h, whh_ref[...], preferred_element_type=jnp.float32)

                # Full-(Bp,4H)-tile nonlinearities (1 sigmoid + 1 tanh EUP
                # pass), then pick the PyTorch-ordered i, f, g, o quarters.
                # TODO(synk): XLU-roll/lane-mask variant of the quarter
                # selection (5-10% per-step) not applied — kept sliced for
                # clarity/correctness.
                sig = jax.nn.sigmoid(gates)
                tnh = jnp.tanh(gates)
                i_g = sig[:, 0:H]
                f_g = sig[:, H:2 * H]
                g_g = tnh[:, 2 * H:3 * H]
                o_g = sig[:, 3 * H:4 * H]

                c_new = f_g * c + i_g * g_g
                h_new = o_g * jnp.tanh(c_new)
                if write_seq:                              # non-final layers only
                    xbuf_ref[pl.ds(row, Bp), :] = h_new
                return h_new, c_new

            h_fin, _ = lax.fori_loop(0, S, step,
                                     (h0_ref[l], c0_ref[l]),
                                     unroll=min(S, 8))
            return h_fin

        h_last = None
        for l in range(L):
            in_ref = x_ref if l == 0 else xbuf_ref
            h_last = run_layer(l, in_ref, write_seq=(l < L - 1))

        # Final nn.Linear folded in: (Bp,H) * (1,H) -> lane-reduce -> (Bp,1)
        logits = jnp.sum(h_last * lin_w_ref[...], axis=-1, keepdims=True)
        out_ref[...] = logits + lin_b_ref[...]

    return kernel


def fused_lstm_forward(x2d, seq_len, lstm_params, lin_w, lin_b, h0, c0):
    """x2d: (S*Bp, E) time-major rows, Bp multiple of 8.  Returns (Bp, 1)."""
    S = seq_len
    SBp, E = x2d.shape
    Bp = SBp // S
    L = len(lstm_params)
    H = h0.shape[-1]

    flat_weights = []
    for lp in lstm_params:
        flat_weights += [lp["wih_t"], lp["whh_t"], lp["bias"]]
    operands = (x2d, *flat_weights, lin_w, lin_b, h0, c0)

    # Resident footprint estimate (operands + scratch) -> scoped VMEM limit.
    def _nbytes(a):
        return int(a.size) * a.dtype.itemsize
    operand_bytes = sum(_nbytes(a) for a in operands)
    scratch_bytes = (S * Bp * 4 * H + S * Bp * H) * 4
    footprint = operand_bytes + scratch_bytes + Bp * 4
    vmem_limit = int(min(64 << 20, max(32 << 20, 2 * footprint + (4 << 20))))

    # Advisory cost estimate for the XLA scheduler.
    flops = 2 * Bp * H
    transcendentals = 0
    in_dim = E
    for _ in range(L):
        flops += 2 * S * Bp * in_dim * 4 * H          # hoisted input projection
        flops += 2 * S * Bp * H * 4 * H               # recurrent dots
        transcendentals += S * (2 * Bp * 4 * H + Bp * H)
        in_dim = H
    bytes_accessed = operand_bytes + Bp * 4

    return pl.pallas_call(
        _make_fused_kernel(L, S, Bp, H, E),
        out_shape=jax.ShapeDtypeStruct((Bp, 1), jnp.float32),
        scratch_shapes=[
            pltpu.VMEM((S * Bp, 4 * H), jnp.float32),  # gx slab
            pltpu.VMEM((S * Bp, H), jnp.float32),      # inter-layer activations
        ],
        compiler_params=pltpu.CompilerParams(vmem_limit_bytes=vmem_limit),
        cost_estimate=pl.CostEstimate(flops=flops,
                                      transcendentals=transcendentals,
                                      bytes_accessed=bytes_accessed),
    )(*operands)


# ----------------------------------------------------------------------------
# Model: parameter init + forward (inference semantics: dropouts are identity)
# ----------------------------------------------------------------------------
def init_params(key, vocab_size, embedding_dim, hidden_dim, lstm_layers):
    keys = jax.random.split(key, 2 + 4 * lstm_layers + 2)
    ki = iter(keys)
    params = {}
    params["embedding"] = jax.random.normal(next(ki), (vocab_size, embedding_dim),
                                            jnp.float32)
    bound = 1.0 / jnp.sqrt(hidden_dim)
    layers = []
    for l in range(lstm_layers):
        in_dim = embedding_dim if l == 0 else hidden_dim
        w_ih = jax.random.uniform(next(ki), (4 * hidden_dim, in_dim),
                                  jnp.float32, -bound, bound)
        w_hh = jax.random.uniform(next(ki), (4 * hidden_dim, hidden_dim),
                                  jnp.float32, -bound, bound)
        b_ih = jax.random.uniform(next(ki), (4 * hidden_dim,),
                                  jnp.float32, -bound, bound)
        b_hh = jax.random.uniform(next(ki), (4 * hidden_dim,),
                                  jnp.float32, -bound, bound)
        layers.append({
            "wih_t": w_ih.T,                                   # (in, 4H)
            "whh_t": w_hh.T,                                   # (H, 4H)
            "bias": (b_ih + b_hh).reshape(1, 4 * hidden_dim),  # (1, 4H)
        })
    params["lstm"] = layers
    lin_w = jax.random.uniform(next(ki), (1, hidden_dim), jnp.float32,
                               -bound, bound)
    lin_b = jax.random.uniform(next(ki), (1,), jnp.float32, -bound, bound)
    params["linear_w"] = lin_w                                 # (1, H) row vector
    params["linear_b"] = lin_b.reshape(1, 1)
    return params


def xavier_normal_state(key, lstm_layers, batch, hidden_dim):
    # torch.nn.init.xavier_normal_ on a (L, B, H) tensor:
    #   fan_in = B * H, fan_out = L * H, std = sqrt(2 / (fan_in + fan_out))
    std = jnp.sqrt(2.0 / (batch * hidden_dim + lstm_layers * hidden_dim))
    return jax.random.normal(key, (lstm_layers, batch, hidden_dim),
                             jnp.float32) * std


@jax.jit
def forward(params, sentence, h0, c0):
    # Embedding gathered directly time-major: (S, B) tokens -> (S, B, E).
    x = jnp.take(params["embedding"], sentence.T, axis=0)
    # dropout1 (Dropout2d) and dropout2 are identity at inference.
    S, B, E = x.shape

    # Pad batch to a sublane multiple (>=8) so vregs / MXU rows aren't mostly
    # padding; padded rows are zero and sliced off at the end.
    # TODO(synk): pack multiple independent requests into the batch dim to
    #             lift MXU row utilization past 8 when throughput matters.
    Bp = max(8, ((B + 7) // 8) * 8)
    pad = Bp - B
    if pad:
        x = jnp.pad(x, ((0, 0), (0, pad), (0, 0)))
        h0 = jnp.pad(h0, ((0, 0), (0, pad), (0, 0)))
        c0 = jnp.pad(c0, ((0, 0), (0, pad), (0, 0)))

    x2d = x.reshape(S * Bp, E)                                 # contiguous, free
    out = fused_lstm_forward(x2d, S, params["lstm"], params["linear_w"],
                             params["linear_b"], h0, c0)       # (Bp, 1)
    return out[:B]                                             # (B, 1)


if __name__ == "__main__":
    # Small, self-consistent configuration
    vocab_size, embedding_dim, hidden_dim, lstm_layers = 50, 16, 32, 2
    batch, seq_len = 2, 8

    key = jax.random.PRNGKey(0)
    k_param, k_tok, k_h, k_c = jax.random.split(key, 4)

    params = init_params(k_param, vocab_size, embedding_dim, hidden_dim,
                         lstm_layers)
    sentence = jax.random.randint(k_tok, (batch, seq_len), 0, vocab_size,
                                  dtype=jnp.int32)
    h0 = xavier_normal_state(k_h, lstm_layers, batch, hidden_dim)
    c0 = xavier_normal_state(k_c, lstm_layers, batch, hidden_dim)

    out = forward(params, sentence, h0, c0)
    jax.block_until_ready(out)
    assert out.shape == (batch, 1)
    print("KERNEL_OK")
</pallas_src>

<mosaic_0001>
module attributes {stable_mosaic.version = 11 : i64} {
  func.func @kernel(%arg0: memref<64x16xf32, #tpu.memory_space<vmem>>, %arg1: memref<16x128xf32, #tpu.memory_space<vmem>>, %arg2: memref<32x128xf32, #tpu.memory_space<vmem>>, %arg3: memref<1x128xf32, #tpu.memory_space<vmem>>, %arg4: memref<32x128xf32, #tpu.memory_space<vmem>>, %arg5: memref<32x128xf32, #tpu.memory_space<vmem>>, %arg6: memref<1x128xf32, #tpu.memory_space<vmem>>, %arg7: memref<1x32xf32, #tpu.memory_space<vmem>>, %arg8: memref<1x1xf32, #tpu.memory_space<vmem>>, %arg9: memref<2x8x32xf32, #tpu.memory_space<vmem>>, %arg10: memref<2x8x32xf32, #tpu.memory_space<vmem>>, %arg11: memref<8x1xf32, #tpu.memory_space<vmem>>, %arg12: memref<64x128xf32, #tpu.memory_space<vmem>>, %arg13: memref<64x32xf32, #tpu.memory_space<vmem>>) attributes {dimension_semantics = [], scalar_prefetch = 0 : i64, scratch_operands = 2 : i64, tpu.core_type = #tpu.core_type<tc>} {
    %c0 = arith.constant 0 : index
    %c0_0 = arith.constant 0 : index
    %0 = vector.load %arg0[%c0, %c0_0] : memref<64x16xf32, #tpu.memory_space<vmem>>, vector<64x16xf32>
    %c0_1 = arith.constant 0 : index
    %c0_2 = arith.constant 0 : index
    %1 = vector.load %arg1[%c0_1, %c0_2] : memref<16x128xf32, #tpu.memory_space<vmem>>, vector<16x128xf32>
    %cst = arith.constant dense<0.000000e+00> : vector<64x128xf32>
    %2 = tpu.matmul %0, %1, %cst {dimension_numbers = #tpu.dot_dimension_numbers<[1], [0], [0], [1], [0, 0, 1, 1], [], []>} : vector<64x16xf32>, vector<16x128xf32>, vector<64x128xf32> -> vector<64x128xf32>
    %c0_3 = arith.constant 0 : index
    %c0_4 = arith.constant 0 : index
    %3 = vector.load %arg3[%c0_3, %c0_4] : memref<1x128xf32, #tpu.memory_space<vmem>>, vector<1x128xf32>
    %4 = vector.broadcast %3 : vector<1x128xf32> to vector<64x128xf32>
    %5 = arith.addf %2, %4 : vector<64x128xf32>
    %c0_5 = arith.constant 0 : index
    %c0_6 = arith.constant 0 : index
    %6 = vector.load %arg12[%c0_5, %c0_6] : memref<64x128xf32, #tpu.memory_space<vmem>>, vector<64x128xf32>
    tpu.vector_store %arg12[%c0_5, %c0_6], %5 {strides = array<i32>} : memref<64x128xf32, #tpu.memory_space<vmem>>, vector<64x128xf32>,
    %c0_7 = arith.constant 0 : index
    %c0_8 = arith.constant 0 : index
    %c0_9 = arith.constant 0 : index
    %7 = vector.load %arg9[%c0_7, %c0_8, %c0_9] : memref<2x8x32xf32, #tpu.memory_space<vmem>>, vector<1x8x32xf32>
    %8 = vector.shape_cast %7 : vector<1x8x32xf32> to vector<8x32xf32>
    %c0_10 = arith.constant 0 : index
    %c0_11 = arith.constant 0 : index
    %c0_12 = arith.constant 0 : index
    %9 = vector.load %arg10[%c0_10, %c0_11, %c0_12] : memref<2x8x32xf32, #tpu.memory_space<vmem>>, vector<1x8x32xf32>
    %10 = vector.shape_cast %9 : vector<1x8x32xf32> to vector<8x32xf32>
    %c0_i32 = arith.constant 0 : i32
    %c8_i32 = arith.constant 8 : i32
    %11 = arith.muli %c0_i32, %c8_i32 : i32
    %12 = tpu.assume_multiple %11, 8 : i32
    %13 = arith.index_cast %12 : i32 to index
    %c0_13 = arith.constant 0 : index
    %14 = vector.load %arg12[%13, %c0_13] : memref<64x128xf32, #tpu.memory_space<vmem>>, vector<8x128xf32>
    %c0_14 = arith.constant 0 : index
    %c0_15 = arith.constant 0 : index
    %15 = vector.load %arg2[%c0_14, %c0_15] : memref<32x128xf32, #tpu.memory_space<vmem>>, vector<32x128xf32>
    %cst_16 = arith.constant dense<0.000000e+00> : vector<8x128xf32>
    %16 = tpu.matmul %8, %15, %cst_16 {dimension_numbers = #tpu.dot_dimension_numbers<[1], [0], [0], [1], [0, 0, 1, 1], [], []>} : vector<8x32xf32>, vector<32x128xf32>, vector<8x128xf32> -> vector<8x128xf32>
    %17 = arith.addf %14, %16 : vector<8x128xf32>
    %18 = arith.negf %17 : vector<8x128xf32>
    %19 = math.exp %18 : vector<8x128xf32>
    %cst_17 = arith.constant 1.000000e+00 : f32
    %20 = vector.broadcast %cst_17 : f32 to vector<8x128xf32>
    %21 = arith.addf %20, %19 : vector<8x128xf32>
    %22 = arith.divf %20, %21 : vector<8x128xf32>
    %23 = math.tanh %17 : vector<8x128xf32>
    %24 = vector.extract_strided_slice %22 {offsets = [0, 0], sizes = [8, 32], strides = [1, 1]} : vector<8x128xf32> to vector<8x32xf32>
    %25 = vector.extract_strided_slice %22 {offsets = [0, 32], sizes = [8, 32], strides = [1, 1]} : vector<8x128xf32> to vector<8x32xf32>
    %26 = vector.extract_strided_slice %23 {offsets = [0, 64], sizes = [8, 32], strides = [1, 1]} : vector<8x128xf32> to vector<8x32xf32>
    %27 = vector.extract_strided_slice %22 {offsets = [0, 96], sizes = [8, 32], strides = [1, 1]} : vector<8x128xf32> to vector<8x32xf32>
    %28 = arith.mulf %25, %10 : vector<8x32xf32>
    %29 = arith.mulf %24, %26 : vector<8x32xf32>
    %30 = arith.addf %28, %29 : vector<8x32xf32>
    %31 = math.tanh %30 : vector<8x32xf32>
    %32 = arith.mulf %27, %31 : vector<8x32xf32>
    %33 = arith.index_cast %12 : i32 to index
    %c0_18 = arith.constant 0 : index
    %34 = vector.load %arg13[%33, %c0_18] : memref<64x32xf32, #tpu.memory_space<vmem>>, vector<8x32xf32>
    tpu.vector_store %arg13[%33, %c0_18], %32 {strides = array<i32>} : memref<64x32xf32, #tpu.memory_space<vmem>>, vector<8x32xf32>,
    %c1_i32 = arith.constant 1 : i32
    %c8_i32_19 = arith.constant 8 : i32
    %35 = arith.muli %c1_i32, %c8_i32_19 : i32
    %36 = tpu.assume_multiple %35, 8 : i32
    %37 = arith.index_cast %36 : i32 to index
    %c0_20 = arith.constant 0 : index
    %38 = vector.load %arg12[%37, %c0_20] : memref<64x128xf32, #tpu.memory_space<vmem>>, vector<8x128xf32>
    %c0_21 = arith.constant 0 : index
    %c0_22 = arith.constant 0 : index
    %39 = vector.load %arg2[%c0_21, %c0_22] : memref<32x128xf32, #tpu.memory_space<vmem>>, vector<32x128xf32>
    %cst_23 = arith.constant dense<0.000000e+00> : vector<8x128xf32>
    %40 = tpu.matmul %32, %39, %cst_23 {dimension_numbers = #tpu.dot_dimension_numbers<[1], [0], [0], [1], [0, 0, 1, 1], [], []>} : vector<8x32xf32>, vector<32x128xf32>, vector<8x128xf32> -> vector<8x128xf32>
    %41 = arith.addf %38, %40 : vector<8x128xf32>
    %42 = arith.negf %41 : vector<8x128xf32>
    %43 = math.exp %42 : vector<8x128xf32>
    %cst_24 = arith.constant 1.000000e+00 : f32
    %44 = vector.broadcast %cst_24 : f32 to vector<8x128xf32>
    %45 = arith.addf %44, %43 : vector<8x128xf32>
    %46 = arith.divf %44, %45 : vector<8x128xf32>
    %47 = math.tanh %41 : vector<8x128xf32>
    %48 = vector.extract_strided_slice %46 {offsets = [0, 0], sizes = [8, 32], strides = [1, 1]} : vector<8x128xf32> to vector<8x32xf32>
    %49 = vector.extract_strided_slice %46 {offsets = [0, 32], sizes = [8, 32], strides = [1, 1]} : vector<8x128xf32> to vector<8x32xf32>
    %50 = vector.extract_strided_slice %47 {offsets = [0, 64], sizes = [8, 32], strides = [1, 1]} : vector<8x128xf32> to vector<8x32xf32>
    %51 = vector.extract_strided_slice %46 {offsets = [0, 96], sizes = [8, 32], strides = [1, 1]} : vector<8x128xf32> to vector<8x32xf32>
    %52 = arith.mulf %49, %30 : vector<8x32xf32>
    %53 = arith.mulf %48, %50 : vector<8x32xf32>
    %54 = arith.addf %52, %53 : vector<8x32xf32>
    %55 = math.tanh %54 : vector<8x32xf32>
    %56 = arith.mulf %51, %55 : vector<8x32xf32>
    %57 = arith.index_cast %36 : i32 to index
    %c0_25 = arith.constant 0 : index
    %58 = vector.load %arg13[%57, %c0_25] : memref<64x32xf32, #tpu.memory_space<vmem>>, vector<8x32xf32>
    tpu.vector_store %arg13[%57, %c0_25], %56 {strides = array<i32>} : memref<64x32xf32, #tpu.memory_space<vmem>>, vector<8x32xf32>,
    %c2_i32 = arith.constant 2 : i32
    %c8_i32_26 = arith.constant 8 : i32
    %59 = arith.muli %c2_i32, %c8_i32_26 : i32
    %60 = tpu.assume_multiple %59, 8 : i32
    %61 = arith.index_cast %60 : i32 to index
    %c0_27 = arith.constant 0 : index
    %62 = vector.load %arg12[%61, %c0_27] : memref<64x128xf32, #tpu.memory_space<vmem>>, vector<8x128xf32>
    %c0_28 = arith.constant 0 : index
    %c0_29 = arith.constant 0 : index
    %63 = vector.load %arg2[%c0_28, %c0_29] : memref<32x128xf32, #tpu.memory_space<vmem>>, vector<32x128xf32>
    %cst_30 = arith.constant dense<0.000000e+00> : vector<8x128xf32>
    %64 = tpu.matmul %56, %63, %cst_30 {dimension_numbers = #tpu.dot_dimension_numbers<[1], [0], [0], [1], [0, 0, 1, 1], [], []>} : vector<8x32xf32>, vector<32x128xf32>, vector<8x128xf32> -> vector<8x128xf32>
    %65 = arith.addf %62, %64 : vector<8x128xf32>
    %66 = arith.negf %65 : vector<8x128xf32>
    %67 = math.exp %66 : vector<8x128xf32>
    %cst_31 = arith.constant 1.000000e+00 : f32
    %68 = vector.broadcast %cst_31 : f32 to vector<8x128xf32>
    %69 = arith.addf %68, %67 : vector<8x128xf32>
    %70 = arith.divf %68, %69 : vector<8x128xf32>
    %71 = math.tanh %65 : vector<8x128xf32>
    %72 = vector.extract_strided_slice %70 {offsets = [0, 0], sizes = [8, 32], strides = [1, 1]} : vector<8x128xf32> to vector<8x32xf32>
    %73 = vector.extract_strided_slice %70 {offsets = [0, 32], sizes = [8, 32], strides = [1, 1]} : vector<8x128xf32> to vector<8x32xf32>
    %74 = vector.extract_strided_slice %71 {offsets = [0, 64], sizes = [8, 32], strides = [1, 1]} : vector<8x128xf32> to vector<8x32xf32>
    %75 = vector.extract_strided_slice %70 {offsets = [0, 96], sizes = [8, 32], strides = [1, 1]} : vector<8x128xf32> to vector<8x32xf32>
    %76 = arith.mulf %73, %54 : vector<8x32xf32>
    %77 = arith.mulf %72, %74 : vector<8x32xf32>
    %78 = arith.addf %76, %77 : vector<8x32xf32>
    %79 = math.tanh %78 : vector<8x32xf32>
    %80 = arith.mulf %75, %79 : vector<8x32xf32>
    %81 = arith.index_cast %60 : i32 to index
    %c0_32 = arith.constant 0 : index
    %82 = vector.load %arg13[%81, %c0_32] : memref<64x32xf32, #tpu.memory_space<vmem>>, vector<8x32xf32>
    tpu.vector_store %arg13[%81, %c0_32], %80 {strides = array<i32>} : memref<64x32xf32, #tpu.memory_space<vmem>>, vector<8x32xf32>,
    %c3_i32 = arith.constant 3 : i32
    %c8_i32_33 = arith.constant 8 : i32
    %83 = arith.muli %c3_i32, %c8_i32_33 : i32
    %84 = tpu.assume_multiple %83, 8 : i32
    %85 = arith.index_cast %84 : i32 to index
    %c0_34 = arith.constant 0 : index
    %86 = vector.load %arg12[%85, %c0_34] : memref<64x128xf32, #tpu.memory_space<vmem>>, vector<8x128xf32>
    %c0_35 = arith.constant 0 : index
    %c0_36 = arith.constant 0 : index
    %87 = vector.load %arg2[%c0_35, %c0_36] : memref<32x128xf32, #tpu.memory_space<vmem>>, vector<32x128xf32>
    %cst_37 = arith.constant dense<0.000000e+00> : vector<8x128xf32>
    %88 = tpu.matmul %80, %87, %cst_37 {dimension_numbers = #tpu.dot_dimension_numbers<[1], [0], [0], [1], [0, 0, 1, 1], [], []>} : vector<8x32xf32>, vector<32x128xf32>, vector<8x128xf32> -> vector<8x128xf32>
    %89 = arith.addf %86, %88 : vector<8x128xf32>
    %90 = arith.negf %89 : vector<8x128xf32>
    %91 = math.exp %90 : vector<8x128xf32>
    %cst_38 = arith.constant 1.000000e+00 : f32
    %92 = vector.broadcast %cst_38 : f32 to vector<8x128xf32>
    %93 = arith.addf %92, %91 : vector<8x128xf32>
    %94 = arith.divf %92, %93 : vector<8x128xf32>
    %95 = math.tanh %89 : vector<8x128xf32>
    %96 = vector.extract_strided_slice %94 {offsets = [0, 0], sizes = [8, 32], strides = [1, 1]} : vector<8x128xf32> to vector<8x32xf32>
    %97 = vector.extract_strided_slice %94 {offsets = [0, 32], sizes = [8, 32], strides = [1, 1]} : vector<8x128xf32> to vector<8x32xf32>
    %98 = vector.extract_strided_slice %95 {offsets = [0, 64], sizes = [8, 32], strides = [1, 1]} : vector<8x128xf32> to vector<8x32xf32>
    %99 = vector.extract_strided_slice %94 {offsets = [0, 96], sizes = [8, 32], strides = [1, 1]} : vector<8x128xf32> to vector<8x32xf32>
    %100 = arith.mulf %97, %78 : vector<8x32xf32>
    %101 = arith.mulf %96, %98 : vector<8x32xf32>
    %102 = arith.addf %100, %101 : vector<8x32xf32>
    %103 = math.tanh %102 : vector<8x32xf32>
    %104 = arith.mulf %99, %103 : vector<8x32xf32>
    %105 = arith.index_cast %84 : i32 to index
    %c0_39 = arith.constant 0 : index
    %106 = vector.load %arg13[%105, %c0_39] : memref<64x32xf32, #tpu.memory_space<vmem>>, vector<8x32xf32>
    tpu.vector_store %arg13[%105, %c0_39], %104 {strides = array<i32>} : memref<64x32xf32, #tpu.memory_space<vmem>>, vector<8x32xf32>,
    %c4_i32 = arith.constant 4 : i32
    %c8_i32_40 = arith.constant 8 : i32
    %107 = arith.muli %c4_i32, %c8_i32_40 : i32
    %108 = tpu.assume_multiple %107, 8 : i32
    %109 = arith.index_cast %108 : i32 to index
    %c0_41 = arith.constant 0 : index
    %110 = vector.load %arg12[%109, %c0_41] : memref<64x128xf32, #tpu.memory_space<vmem>>, vector<8x128xf32>
    %c0_42 = arith.constant 0 : index
    %c0_43 = arith.constant 0 : index
    %111 = vector.load %arg2[%c0_42, %c0_43] : memref<32x128xf32, #tpu.memory_space<vmem>>, vector<32x128xf32>
    %cst_44 = arith.constant dense<0.000000e+00> : vector<8x128xf32>
    %112 = tpu.matmul %104, %111, %cst_44 {dimension_numbers = #tpu.dot_dimension_numbers<[1], [0], [0], [1], [0, 0, 1, 1], [], []>} : vector<8x32xf32>, vector<32x128xf32>, vector<8x128xf32> -> vector<8x128xf32>
    %113 = arith.addf %110, %112 : vector<8x128xf32>
    %114 = arith.negf %113 : vector<8x128xf32>
    %115 = math.exp %114 : vector<8x128xf32>
    %cst_45 = arith.constant 1.000000e+00 : f32
    %116 = vector.broadcast %cst_45 : f32 to vector<8x128xf32>
    %117 = arith.addf %116, %115 : vector<8x128xf32>
    %118 = arith.divf %116, %117 : vector<8x128xf32>
    %119 = math.tanh %113 : vector<8x128xf32>
    %120 = vector.extract_strided_slice %118 {offsets = [0, 0], sizes = [8, 32], strides = [1, 1]} : vector<8x128xf32> to vector<8x32xf32>
    %121 = vector.extract_strided_slice %118 {offsets = [0, 32], sizes = [8, 32], strides = [1, 1]} : vector<8x128xf32> to vector<8x32xf32>
    %122 = vector.extract_strided_slice %119 {offsets = [0, 64], sizes = [8, 32], strides = [1, 1]} : vector<8x128xf32> to vector<8x32xf32>
    %123 = vector.extract_strided_slice %118 {offsets = [0, 96], sizes = [8, 32], strides = [1, 1]} : vector<8x128xf32> to vector<8x32xf32>
    %124 = arith.mulf %121, %102 : vector<8x32xf32>
    %125 = arith.mulf %120, %122 : vector<8x32xf32>
    %126 = arith.addf %124, %125 : vector<8x32xf32>
    %127 = math.tanh %126 : vector<8x32xf32>
    %128 = arith.mulf %123, %127 : vector<8x32xf32>
    %129 = arith.index_cast %108 : i32 to index
    %c0_46 = arith.constant 0 : index
    %130 = vector.load %arg13[%129, %c0_46] : memref<64x32xf32, #tpu.memory_space<vmem>>, vector<8x32xf32>
    tpu.vector_store %arg13[%129, %c0_46], %128 {strides = array<i32>} : memref<64x32xf32, #tpu.memory_space<vmem>>, vector<8x32xf32>,
    %c5_i32 = arith.constant 5 : i32
    %c8_i32_47 = arith.constant 8 : i32
    %131 = arith.muli %c5_i32, %c8_i32_47 : i32
    %132 = tpu.assume_multiple %131, 8 : i32
    %133 = arith.index_cast %132 : i32 to index
    %c0_48 = arith.constant 0 : index
    %134 = vector.load %arg12[%133, %c0_48] : memref<64x128xf32, #tpu.memory_space<vmem>>, vector<8x128xf32>
    %c0_49 = arith.constant 0 : index
    %c0_50 = arith.constant 0 : index
    %135 = vector.load %arg2[%c0_49, %c0_50] : memref<32x128xf32, #tpu.memory_space<vmem>>, vector<32x128xf32>
    %cst_51 = arith.constant dense<0.000000e+00> : vector<8x128xf32>
    %136 = tpu.matmul %128, %135, %cst_51 {dimension_numbers = #tpu.dot_dimension_numbers<[1], [0], [0], [1], [0, 0, 1, 1], [], []>} : vector<8x32xf32>, vector<32x128xf32>, vector<8x128xf32> -> vector<8x128xf32>
    %137 = arith.addf %134, %136 : vector<8x128xf32>
    %138 = arith.negf %137 : vector<8x128xf32>
    %139 = math.exp %138 : vector<8x128xf32>
    %cst_52 = arith.constant 1.000000e+00 : f32
    %140 = vector.broadcast %cst_52 : f32 to vector<8x128xf32>
    %141 = arith.addf %140, %139 : vector<8x128xf32>
    %142 = arith.divf %140, %141 : vector<8x128xf32>
    %143 = math.tanh %137 : vector<8x128xf32>
    %144 = vector.extract_strided_slice %142 {offsets = [0, 0], sizes = [8, 32], strides = [1, 1]} : vector<8x128xf32> to vector<8x32xf32>
    %145 = vector.extract_strided_slice %142 {offsets = [0, 32], sizes = [8, 32], strides = [1, 1]} : vector<8x128xf32> to vector<8x32xf32>
    %146 = vector.extract_strided_slice %143 {offsets = [0, 64], sizes = [8, 32], strides = [1, 1]} : vector<8x128xf32> to vector<8x32xf32>
    %147 = vector.extract_strided_slice %142 {offsets = [0, 96], sizes = [8, 32], strides = [1, 1]} : vector<8x128xf32> to vector<8x32xf32>
    %148 = arith.mulf %145, %126 : vector<8x32xf32>
    %149 = arith.mulf %144, %146 : vector<8x32xf32>
    %150 = arith.addf %148, %149 : vector<8x32xf32>
    %151 = math.tanh %150 : vector<8x32xf32>
    %152 = arith.mulf %147, %151 : vector<8x32xf32>
    %153 = arith.index_cast %132 : i32 to index
    %c0_53 = arith.constant 0 : index
    %154 = vector.load %arg13[%153, %c0_53] : memref<64x32xf32, #tpu.memory_space<vmem>>, vector<8x32xf32>
    tpu.vector_store %arg13[%153, %c0_53], %152 {strides = array<i32>} : memref<64x32xf32, #tpu.memory_space<vmem>>, vector<8x32xf32>,
    %c6_i32 = arith.constant 6 : i32
    %c8_i32_54 = arith.constant 8 : i32
    %155 = arith.muli %c6_i32, %c8_i32_54 : i32
    %156 = tpu.assume_multiple %155, 8 : i32
    %157 = arith.index_cast %156 : i32 to index
    %c0_55 = arith.constant 0 : index
    %158 = vector.load %arg12[%157, %c0_55] : memref<64x128xf32, #tpu.memory_space<vmem>>, vector<8x128xf32>
    %c0_56 = arith.constant 0 : index
    %c0_57 = arith.constant 0 : index
    %159 = vector.load %arg2[%c0_56, %c0_57] : memref<32x128xf32, #tpu.memory_space<vmem>>, vector<32x128xf32>
    %cst_58 = arith.constant dense<0.000000e+00> : vector<8x128xf32>
    %160 = tpu.matmul %152, %159, %cst_58 {dimension_numbers = #tpu.dot_dimension_numbers<[1], [0], [0], [1], [0, 0, 1, 1], [], []>} : vector<8x32xf32>, vector<32x128xf32>, vector<8x128xf32> -> vector<8x128xf32>
    %161 = arith.addf %158, %160 : vector<8x128xf32>
    %162 = arith.negf %161 : vector<8x128xf32>
    %163 = math.exp %162 : vector<8x128xf32>
    %cst_59 = arith.constant 1.000000e+00 : f32
    %164 = vector.broadcast %cst_59 : f32 to vector<8x128xf32>
    %165 = arith.addf %164, %163 : vector<8x128xf32>
    %166 = arith.divf %164, %165 : vector<8x128xf32>
    %167 = math.tanh %161 : vector<8x128xf32>
    %168 = vector.extract_strided_slice %166 {offsets = [0, 0], sizes = [8, 32], strides = [1, 1]} : vector<8x128xf32> to vector<8x32xf32>
    %169 = vector.extract_strided_slice %166 {offsets = [0, 32], sizes = [8, 32], strides = [1, 1]} : vector<8x128xf32> to vector<8x32xf32>
    %170 = vector.extract_strided_slice %167 {offsets = [0, 64], sizes = [8, 32], strides = [1, 1]} : vector<8x128xf32> to vector<8x32xf32>
    %171 = vector.extract_strided_slice %166 {offsets = [0, 96], sizes = [8, 32], strides = [1, 1]} : vector<8x128xf32> to vector<8x32xf32>
    %172 = arith.mulf %169, %150 : vector<8x32xf32>
    %173 = arith.mulf %168, %170 : vector<8x32xf32>
    %174 = arith.addf %172, %173 : vector<8x32xf32>
    %175 = math.tanh %174 : vector<8x32xf32>
    %176 = arith.mulf %171, %175 : vector<8x32xf32>
    %177 = arith.index_cast %156 : i32 to index
    %c0_60 = arith.constant 0 : index
    %178 = vector.load %arg13[%177, %c0_60] : memref<64x32xf32, #tpu.memory_space<vmem>>, vector<8x32xf32>
    tpu.vector_store %arg13[%177, %c0_60], %176 {strides = array<i32>} : memref<64x32xf32, #tpu.memory_space<vmem>>, vector<8x32xf32>,
    %c7_i32 = arith.constant 7 : i32
    %c8_i32_61 = arith.constant 8 : i32
    %179 = arith.muli %c7_i32, %c8_i32_61 : i32
    %180 = tpu.assume_multiple %179, 8 : i32
    %181 = arith.index_cast %180 : i32 to index
    %c0_62 = arith.constant 0 : index
    %182 = vector.load %arg12[%181, %c0_62] : memref<64x128xf32, #tpu.memory_space<vmem>>, vector<8x128xf32>
    %c0_63 = arith.constant 0 : index
    %c0_64 = arith.constant 0 : index
    %183 = vector.load %arg2[%c0_63, %c0_64] : memref<32x128xf32, #tpu.memory_space<vmem>>, vector<32x128xf32>
    %cst_65 = arith.constant dense<0.000000e+00> : vector<8x128xf32>
    %184 = tpu.matmul %176, %183, %cst_65 {dimension_numbers = #tpu.dot_dimension_numbers<[1], [0], [0], [1], [0, 0, 1, 1], [], []>} : vector<8x32xf32>, vector<32x128xf32>, vector<8x128xf32> -> vector<8x128xf32>
    %185 = arith.addf %182, %184 : vector<8x128xf32>
    %186 = arith.negf %185 : vector<8x128xf32>
    %187 = math.exp %186 : vector<8x128xf32>
    %cst_66 = arith.constant 1.000000e+00 : f32
    %188 = vector.broadcast %cst_66 : f32 to vector<8x128xf32>
    %189 = arith.addf %188, %187 : vector<8x128xf32>
    %190 = arith.divf %188, %189 : vector<8x128xf32>
    %191 = math.tanh %185 : vector<8x128xf32>
    %192 = vector.extract_strided_slice %190 {offsets = [0, 0], sizes = [8, 32], strides = [1, 1]} : vector<8x128xf32> to vector<8x32xf32>
    %193 = vector.extract_strided_slice %190 {offsets = [0, 32], sizes = [8, 32], strides = [1, 1]} : vector<8x128xf32> to vector<8x32xf32>
    %194 = vector.extract_strided_slice %191 {offsets = [0, 64], sizes = [8, 32], strides = [1, 1]} : vector<8x128xf32> to vector<8x32xf32>
    %195 = vector.extract_strided_slice %190 {offsets = [0, 96], sizes = [8, 32], strides = [1, 1]} : vector<8x128xf32> to vector<8x32xf32>
    %196 = arith.mulf %193, %174 : vector<8x32xf32>
    %197 = arith.mulf %192, %194 : vector<8x32xf32>
    %198 = arith.addf %196, %197 : vector<8x32xf32>
    %199 = math.tanh %198 : vector<8x32xf32>
    %200 = arith.mulf %195, %199 : vector<8x32xf32>
    %201 = arith.index_cast %180 : i32 to index
    %c0_67 = arith.constant 0 : index
    %202 = vector.load %arg13[%201, %c0_67] : memref<64x32xf32, #tpu.memory_space<vmem>>, vector<8x32xf32>
    tpu.vector_store %arg13[%201, %c0_67], %200 {strides = array<i32>} : memref<64x32xf32, #tpu.memory_space<vmem>>, vector<8x32xf32>,
    %c8_i32_68 = arith.constant 8 : i32
    %c0_69 = arith.constant 0 : index
    %c0_70 = arith.constant 0 : index
    %203 = vector.load %arg13[%c0_69, %c0_70] : memref<64x32xf32, #tpu.memory_space<vmem>>, vector<64x32xf32>
    %c0_71 = arith.constant 0 : index
    %c0_72 = arith.constant 0 : index
    %204 = vector.load %arg4[%c0_71, %c0_72] : memref<32x128xf32, #tpu.memory_space<vmem>>, vector<32x128xf32>
    %cst_73 = arith.constant dense<0.000000e+00> : vector<64x128xf32>
    %205 = tpu.matmul %203, %204, %cst_73 {dimension_numbers = #tpu.dot_dimension_numbers<[1], [0], [0], [1], [0, 0, 1, 1], [], []>} : vector<64x32xf32>, vector<32x128xf32>, vector<64x128xf32> -> vector<64x128xf32>
    %c0_74 = arith.constant 0 : index
    %c0_75 = arith.constant 0 : index
    %206 = vector.load %arg6[%c0_74, %c0_75] : memref<1x128xf32, #tpu.memory_space<vmem>>, vector<1x128xf32>
    %207 = vector.broadcast %206 : vector<1x128xf32> to vector<64x128xf32>
    %208 = arith.addf %205, %207 : vector<64x128xf32>
    %c0_76 = arith.constant 0 : index
    %c0_77 = arith.constant 0 : index
    %209 = vector.load %arg12[%c0_76, %c0_77] : memref<64x128xf32, #tpu.memory_space<vmem>>, vector<64x128xf32>
    tpu.vector_store %arg12[%c0_76, %c0_77], %208 {strides = array<i32>} : memref<64x128xf32, #tpu.memory_space<vmem>>, vector<64x128xf32>,
    %c1 = arith.constant 1 : index
    %c0_78 = arith.constant 0 : index
    %c0_79 = arith.constant 0 : index
    %210 = vector.load %arg9[%c1, %c0_78, %c0_79] : memref<2x8x32xf32, #tpu.memory_space<vmem>>, vector<1x8x32xf32>
    %211 = vector.shape_cast %210 : vector<1x8x32xf32> to vector<8x32xf32>
    %c1_80 = arith.constant 1 : index
    %c0_81 = arith.constant 0 : index
    %c0_82 = arith.constant 0 : index
    %212 = vector.load %arg10[%c1_80, %c0_81, %c0_82] : memref<2x8x32xf32, #tpu.memory_space<vmem>>, vector<1x8x32xf32>
    %213 = vector.shape_cast %212 : vector<1x8x32xf32> to vector<8x32xf32>
    %c0_i32_83 = arith.constant 0 : i32
    %c8_i32_84 = arith.constant 8 : i32
    %214 = arith.muli %c0_i32_83, %c8_i32_84 : i32
    %215 = tpu.assume_multiple %214, 8 : i32
    %216 = arith.index_cast %215 : i32 to index
    %c0_85 = arith.constant 0 : index
    %217 = vector.load %arg12[%216, %c0_85] : memref<64x128xf32, #tpu.memory_space<vmem>>, vector<8x128xf32>
    %c0_86 = arith.constant 0 : index
    %c0_87 = arith.constant 0 : index
    %218 = vector.load %arg5[%c0_86, %c0_87] : memref<32x128xf32, #tpu.memory_space<vmem>>, vector<32x128xf32>
    %cst_88 = arith.constant dense<0.000000e+00> : vector<8x128xf32>
    %219 = tpu.matmul %211, %218, %cst_88 {dimension_numbers = #tpu.dot_dimension_numbers<[1], [0], [0], [1], [0, 0, 1, 1], [], []>} : vector<8x32xf32>, vector<32x128xf32>, vector<8x128xf32> -> vector<8x128xf32>
    %220 = arith.addf %217, %219 : vector<8x128xf32>
    %221 = arith.negf %220 : vector<8x128xf32>
    %222 = math.exp %221 : vector<8x128xf32>
    %cst_89 = arith.constant 1.000000e+00 : f32
    %223 = vector.broadcast %cst_89 : f32 to vector<8x128xf32>
    %224 = arith.addf %223, %222 : vector<8x128xf32>
    %225 = arith.divf %223, %224 : vector<8x128xf32>
    %226 = math.tanh %220 : vector<8x128xf32>
    %227 = vector.extract_strided_slice %225 {offsets = [0, 0], sizes = [8, 32], strides = [1, 1]} : vector<8x128xf32> to vector<8x32xf32>
    %228 = vector.extract_strided_slice %225 {offsets = [0, 32], sizes = [8, 32], strides = [1, 1]} : vector<8x128xf32> to vector<8x32xf32>
    %229 = vector.extract_strided_slice %226 {offsets = [0, 64], sizes = [8, 32], strides = [1, 1]} : vector<8x128xf32> to vector<8x32xf32>
    %230 = vector.extract_strided_slice %225 {offsets = [0, 96], sizes = [8, 32], strides = [1, 1]} : vector<8x128xf32> to vector<8x32xf32>
    %231 = arith.mulf %228, %213 : vector<8x32xf32>
    %232 = arith.mulf %227, %229 : vector<8x32xf32>
    %233 = arith.addf %231, %232 : vector<8x32xf32>
    %234 = math.tanh %233 : vector<8x32xf32>
    %235 = arith.mulf %230, %234 : vector<8x32xf32>
    %c1_i32_90 = arith.constant 1 : i32
    %c8_i32_91 = arith.constant 8 : i32
    %236 = arith.muli %c1_i32_90, %c8_i32_91 : i32
    %237 = tpu.assume_multiple %236, 8 : i32
    %238 = arith.index_cast %237 : i32 to index
    %c0_92 = arith.constant 0 : index
    %239 = vector.load %arg12[%238, %c0_92] : memref<64x128xf32, #tpu.memory_space<vmem>>, vector<8x128xf32>
    %c0_93 = arith.constant 0 : index
    %c0_94 = arith.constant 0 : index
    %240 = vector.load %arg5[%c0_93, %c0_94] : memref<32x128xf32, #tpu.memory_space<vmem>>, vector<32x128xf32>
    %cst_95 = arith.constant dense<0.000000e+00> : vector<8x128xf32>
    %241 = tpu.matmul %235, %240, %cst_95 {dimension_numbers = #tpu.dot_dimension_numbers<[1], [0], [0], [1], [0, 0, 1, 1], [], []>} : vector<8x32xf32>, vector<32x128xf32>, vector<8x128xf32> -> vector<8x128xf32>
    %242 = arith.addf %239, %241 : vector<8x128xf32>
    %243 = arith.negf %242 : vector<8x128xf32>
    %244 = math.exp %243 : vector<8x128xf32>
    %cst_96 = arith.constant 1.000000e+00 : f32
    %245 = vector.broadcast %cst_96 : f32 to vector<8x128xf32>
    %246 = arith.addf %245, %244 : vector<8x128xf32>
    %247 = arith.divf %245, %246 : vector<8x128xf32>
    %248 = math.tanh %242 : vector<8x128xf32>
    %249 = vector.extract_strided_slice %247 {offsets = [0, 0], sizes = [8, 32], strides = [1, 1]} : vector<8x128xf32> to vector<8x32xf32>
    %250 = vector.extract_strided_slice %247 {offsets = [0, 32], sizes = [8, 32], strides = [1, 1]} : vector<8x128xf32> to vector<8x32xf32>
    %251 = vector.extract_strided_slice %248 {offsets = [0, 64], sizes = [8, 32], strides = [1, 1]} : vector<8x128xf32> to vector<8x32xf32>
    %252 = vector.extract_strided_slice %247 {offsets = [0, 96], sizes = [8, 32], strides = [1, 1]} : vector<8x128xf32> to vector<8x32xf32>
    %253 = arith.mulf %250, %233 : vector<8x32xf32>
    %254 = arith.mulf %249, %251 : vector<8x32xf32>
    %255 = arith.addf %253, %254 : vector<8x32xf32>
    %256 = math.tanh %255 : vector<8x32xf32>
    %257 = arith.mulf %252, %256 : vector<8x32xf32>
    %c2_i32_97 = arith.constant 2 : i32
    %c8_i32_98 = arith.constant 8 : i32
    %258 = arith.muli %c2_i32_97, %c8_i32_98 : i32
    %259 = tpu.assume_multiple %258, 8 : i32
    %260 = arith.index_cast %259 : i32 to index
    %c0_99 = arith.constant 0 : index
    %261 = vector.load %arg12[%260, %c0_99] : memref<64x128xf32, #tpu.memory_space<vmem>>, vector<8x128xf32>
    %c0_100 = arith.constant 0 : index
    %c0_101 = arith.constant 0 : index
    %262 = vector.load %arg5[%c0_100, %c0_101] : memref<32x128xf32, #tpu.memory_space<vmem>>, vector<32x128xf32>
    %cst_102 = arith.constant dense<0.000000e+00> : vector<8x128xf32>
    %263 = tpu.matmul %257, %262, %cst_102 {dimension_numbers = #tpu.dot_dimension_numbers<[1], [0], [0], [1], [0, 0, 1, 1], [], []>} : vector<8x32xf32>, vector<32x128xf32>, vector<8x128xf32> -> vector<8x128xf32>
    %264 = arith.addf %261, %263 : vector<8x128xf32>
    %265 = arith.negf %264 : vector<8x128xf32>
    %266 = math.exp %265 : vector<8x128xf32>
    %cst_103 = arith.constant 1.000000e+00 : f32
    %267 = vector.broadcast %cst_103 : f32 to vector<8x128xf32>
    %268 = arith.addf %267, %266 : vector<8x128xf32>
    %269 = arith.divf %267, %268 : vector<8x128xf32>
    %270 = math.tanh %264 : vector<8x128xf32>
    %271 = vector.extract_strided_slice %269 {offsets = [0, 0], sizes = [8, 32], strides = [1, 1]} : vector<8x128xf32> to vector<8x32xf32>
    %272 = vector.extract_strided_slice %269 {offsets = [0, 32], sizes = [8, 32], strides = [1, 1]} : vector<8x128xf32> to vector<8x32xf32>
    %273 = vector.extract_strided_slice %270 {offsets = [0, 64], sizes = [8, 32], strides = [1, 1]} : vector<8x128xf32> to vector<8x32xf32>
    %274 = vector.extract_strided_slice %269 {offsets = [0, 96], sizes = [8, 32], strides = [1, 1]} : vector<8x128xf32> to vector<8x32xf32>
    %275 = arith.mulf %272, %255 : vector<8x32xf32>
    %276 = arith.mulf %271, %273 : vector<8x32xf32>
    %277 = arith.addf %275, %276 : vector<8x32xf32>
    %278 = math.tanh %277 : vector<8x32xf32>
    %279 = arith.mulf %274, %278 : vector<8x32xf32>
    %c3_i32_104 = arith.constant 3 : i32
    %c8_i32_105 = arith.constant 8 : i32
    %280 = arith.muli %c3_i32_104, %c8_i32_105 : i32
    %281 = tpu.assume_multiple %280, 8 : i32
    %282 = arith.index_cast %281 : i32 to index
    %c0_106 = arith.constant 0 : index
    %283 = vector.load %arg12[%282, %c0_106] : memref<64x128xf32, #tpu.memory_space<vmem>>, vector<8x128xf32>
    %c0_107 = arith.constant 0 : index
    %c0_108 = arith.constant 0 : index
    %284 = vector.load %arg5[%c0_107, %c0_108] : memref<32x128xf32, #tpu.memory_space<vmem>>, vector<32x128xf32>
    %cst_109 = arith.constant dense<0.000000e+00> : vector<8x128xf32>
    %285 = tpu.matmul %279, %284, %cst_109 {dimension_numbers = #tpu.dot_dimension_numbers<[1], [0], [0], [1], [0, 0, 1, 1], [], []>} : vector<8x32xf32>, vector<32x128xf32>, vector<8x128xf32> -> vector<8x128xf32>
    %286 = arith.addf %283, %285 : vector<8x128xf32>
    %287 = arith.negf %286 : vector<8x128xf32>
    %288 = math.exp %287 : vector<8x128xf32>
    %cst_110 = arith.constant 1.000000e+00 : f32
    %289 = vector.broadcast %cst_110 : f32 to vector<8x128xf32>
    %290 = arith.addf %289, %288 : vector<8x128xf32>
    %291 = arith.divf %289, %290 : vector<8x128xf32>
    %292 = math.tanh %286 : vector<8x128xf32>
    %293 = vector.extract_strided_slice %291 {offsets = [0, 0], sizes = [8, 32], strides = [1, 1]} : vector<8x128xf32> to vector<8x32xf32>
    %294 = vector.extract_strided_slice %291 {offsets = [0, 32], sizes = [8, 32], strides = [1, 1]} : vector<8x128xf32> to vector<8x32xf32>
    %295 = vector.extract_strided_slice %292 {offsets = [0, 64], sizes = [8, 32], strides = [1, 1]} : vector<8x128xf32> to vector<8x32xf32>
    %296 = vector.extract_strided_slice %291 {offsets = [0, 96], sizes = [8, 32], strides = [1, 1]} : vector<8x128xf32> to vector<8x32xf32>
    %297 = arith.mulf %294, %277 : vector<8x32xf32>
    %298 = arith.mulf %293, %295 : vector<8x32xf32>
    %299 = arith.addf %297, %298 : vector<8x32xf32>
    %300 = math.tanh %299 : vector<8x32xf32>
    %301 = arith.mulf %296, %300 : vector<8x32xf32>
    %c4_i32_111 = arith.constant 4 : i32
    %c8_i32_112 = arith.constant 8 : i32
    %302 = arith.muli %c4_i32_111, %c8_i32_112 : i32
    %303 = tpu.assume_multiple %302, 8 : i32
    %304 = arith.index_cast %303 : i32 to index
    %c0_113 = arith.constant 0 : index
    %305 = vector.load %arg12[%304, %c0_113] : memref<64x128xf32, #tpu.memory_space<vmem>>, vector<8x128xf32>
    %c0_114 = arith.constant 0 : index
    %c0_115 = arith.constant 0 : index
    %306 = vector.load %arg5[%c0_114, %c0_115] : memref<32x128xf32, #tpu.memory_space<vmem>>, vector<32x128xf32>
    %cst_116 = arith.constant dense<0.000000e+00> : vector<8x128xf32>
    %307 = tpu.matmul %301, %306, %cst_116 {dimension_numbers = #tpu.dot_dimension_numbers<[1], [0], [0], [1], [0, 0, 1, 1], [], []>} : vector<8x32xf32>, vector<32x128xf32>, vector<8x128xf32> -> vector<8x128xf32>
    %308 = arith.addf %305, %307 : vector<8x128xf32>
    %309 = arith.negf %308 : vector<8x128xf32>
    %310 = math.exp %309 : vector<8x128xf32>
    %cst_117 = arith.constant 1.000000e+00 : f32
    %311 = vector.broadcast %cst_117 : f32 to vector<8x128xf32>
    %312 = arith.addf %311, %310 : vector<8x128xf32>
    %313 = arith.divf %311, %312 : vector<8x128xf32>
    %314 = math.tanh %308 : vector<8x128xf32>
    %315 = vector.extract_strided_slice %313 {offsets = [0, 0], sizes = [8, 32], strides = [1, 1]} : vector<8x128xf32> to vector<8x32xf32>
    %316 = vector.extract_strided_slice %313 {offsets = [0, 32], sizes = [8, 32], strides = [1, 1]} : vector<8x128xf32> to vector<8x32xf32>
    %317 = vector.extract_strided_slice %314 {offsets = [0, 64], sizes = [8, 32], strides = [1, 1]} : vector<8x128xf32> to vector<8x32xf32>
    %318 = vector.extract_strided_slice %313 {offsets = [0, 96], sizes = [8, 32], strides = [1, 1]} : vector<8x128xf32> to vector<8x32xf32>
    %319 = arith.mulf %316, %299 : vector<8x32xf32>
    %320 = arith.mulf %315, %317 : vector<8x32xf32>
    %321 = arith.addf %319, %320 : vector<8x32xf32>
    %322 = math.tanh %321 : vector<8x32xf32>
    %323 = arith.mulf %318, %322 : vector<8x32xf32>
    %c5_i32_118 = arith.constant 5 : i32
    %c8_i32_119 = arith.constant 8 : i32
    %324 = arith.muli %c5_i32_118, %c8_i32_119 : i32
    %325 = tpu.assume_multiple %324, 8 : i32
    %326 = arith.index_cast %325 : i32 to index
    %c0_120 = arith.constant 0 : index
    %327 = vector.load %arg12[%326, %c0_120] : memref<64x128xf32, #tpu.memory_space<vmem>>, vector<8x128xf32>
    %c0_121 = arith.constant 0 : index
    %c0_122 = arith.constant 0 : index
    %328 = vector.load %arg5[%c0_121, %c0_122] : memref<32x128xf32, #tpu.memory_space<vmem>>, vector<32x128xf32>
    %cst_123 = arith.constant dense<0.000000e+00> : vector<8x128xf32>
    %329 = tpu.matmul %323, %328, %cst_123 {dimension_numbers = #tpu.dot_dimension_numbers<[1], [0], [0], [1], [0, 0, 1, 1], [], []>} : vector<8x32xf32>, vector<32x128xf32>, vector<8x128xf32> -> vector<8x128xf32>
    %330 = arith.addf %327, %329 : vector<8x128xf32>
    %331 = arith.negf %330 : vector<8x128xf32>
    %332 = math.exp %331 : vector<8x128xf32>
    %cst_124 = arith.constant 1.000000e+00 : f32
    %333 = vector.broadcast %cst_124 : f32 to vector<8x128xf32>
    %334 = arith.addf %333, %332 : vector<8x128xf32>
    %335 = arith.divf %333, %334 : vector<8x128xf32>
    %336 = math.tanh %330 : vector<8x128xf32>
    %337 = vector.extract_strided_slice %335 {offsets = [0, 0], sizes = [8, 32], strides = [1, 1]} : vector<8x128xf32> to vector<8x32xf32>
    %338 = vector.extract_strided_slice %335 {offsets = [0, 32], sizes = [8, 32], strides = [1, 1]} : vector<8x128xf32> to vector<8x32xf32>
    %339 = vector.extract_strided_slice %336 {offsets = [0, 64], sizes = [8, 32], strides = [1, 1]} : vector<8x128xf32> to vector<8x32xf32>
    %340 = vector.extract_strided_slice %335 {offsets = [0, 96], sizes = [8, 32], strides = [1, 1]} : vector<8x128xf32> to vector<8x32xf32>
    %341 = arith.mulf %338, %321 : vector<8x32xf32>
    %342 = arith.mulf %337, %339 : vector<8x32xf32>
    %343 = arith.addf %341, %342 : vector<8x32xf32>
    %344 = math.tanh %343 : vector<8x32xf32>
    %345 = arith.mulf %340, %344 : vector<8x32xf32>
    %c6_i32_125 = arith.constant 6 : i32
    %c8_i32_126 = arith.constant 8 : i32
    %346 = arith.muli %c6_i32_125, %c8_i32_126 : i32
    %347 = tpu.assume_multiple %346, 8 : i32
    %348 = arith.index_cast %347 : i32 to index
    %c0_127 = arith.constant 0 : index
    %349 = vector.load %arg12[%348, %c0_127] : memref<64x128xf32, #tpu.memory_space<vmem>>, vector<8x128xf32>
    %c0_128 = arith.constant 0 : index
    %c0_129 = arith.constant 0 : index
    %350 = vector.load %arg5[%c0_128, %c0_129] : memref<32x128xf32, #tpu.memory_space<vmem>>, vector<32x128xf32>
    %cst_130 = arith.constant dense<0.000000e+00> : vector<8x128xf32>
    %351 = tpu.matmul %345, %350, %cst_130 {dimension_numbers = #tpu.dot_dimension_numbers<[1], [0], [0], [1], [0, 0, 1, 1], [], []>} : vector<8x32xf32>, vector<32x128xf32>, vector<8x128xf32> -> vector<8x128xf32>
    %352 = arith.addf %349, %351 : vector<8x128xf32>
    %353 = arith.negf %352 : vector<8x128xf32>
    %354 = math.exp %353 : vector<8x128xf32>
    %cst_131 = arith.constant 1.000000e+00 : f32
    %355 = vector.broadcast %cst_131 : f32 to vector<8x128xf32>
    %356 = arith.addf %355, %354 : vector<8x128xf32>
    %357 = arith.divf %355, %356 : vector<8x128xf32>
    %358 = math.tanh %352 : vector<8x128xf32>
    %359 = vector.extract_strided_slice %357 {offsets = [0, 0], sizes = [8, 32], strides = [1, 1]} : vector<8x128xf32> to vector<8x32xf32>
    %360 = vector.extract_strided_slice %357 {offsets = [0, 32], sizes = [8, 32], strides = [1, 1]} : vector<8x128xf32> to vector<8x32xf32>
    %361 = vector.extract_strided_slice %358 {offsets = [0, 64], sizes = [8, 32], strides = [1, 1]} : vector<8x128xf32> to vector<8x32xf32>
    %362 = vector.extract_strided_slice %357 {offsets = [0, 96], sizes = [8, 32], strides = [1, 1]} : vector<8x128xf32> to vector<8x32xf32>
    %363 = arith.mulf %360, %343 : vector<8x32xf32>
    %364 = arith.mulf %359, %361 : vector<8x32xf32>
    %365 = arith.addf %363, %364 : vector<8x32xf32>
    %366 = math.tanh %365 : vector<8x32xf32>
    %367 = arith.mulf %362, %366 : vector<8x32xf32>
    %c7_i32_132 = arith.constant 7 : i32
    %c8_i32_133 = arith.constant 8 : i32
    %368 = arith.muli %c7_i32_132, %c8_i32_133 : i32
    %369 = tpu.assume_multiple %368, 8 : i32
    %370 = arith.index_cast %369 : i32 to index
    %c0_134 = arith.constant 0 : index
    %371 = vector.load %arg12[%370, %c0_134] : memref<64x128xf32, #tpu.memory_space<vmem>>, vector<8x128xf32>
    %c0_135 = arith.constant 0 : index
    %c0_136 = arith.constant 0 : index
    %372 = vector.load %arg5[%c0_135, %c0_136] : memref<32x128xf32, #tpu.memory_space<vmem>>, vector<32x128xf32>
    %cst_137 = arith.constant dense<0.000000e+00> : vector<8x128xf32>
    %373 = tpu.matmul %367, %372, %cst_137 {dimension_numbers = #tpu.dot_dimension_numbers<[1], [0], [0], [1], [0, 0, 1, 1], [], []>} : vector<8x32xf32>, vector<32x128xf32>, vector<8x128xf32> -> vector<8x128xf32>
    %374 = arith.addf %371, %373 : vector<8x128xf32>
    %375 = arith.negf %374 : vector<8x128xf32>
    %376 = math.exp %375 : vector<8x128xf32>
    %cst_138 = arith.constant 1.000000e+00 : f32
    %377 = vector.broadcast %cst_138 : f32 to vector<8x128xf32>
    %378 = arith.addf %377, %376 : vector<8x128xf32>
    %379 = arith.divf %377, %378 : vector<8x128xf32>
    %380 = math.tanh %374 : vector<8x128xf32>
    %381 = vector.extract_strided_slice %379 {offsets = [0, 0], sizes = [8, 32], strides = [1, 1]} : vector<8x128xf32> to vector<8x32xf32>
    %382 = vector.extract_strided_slice %379 {offsets = [0, 32], sizes = [8, 32], strides = [1, 1]} : vector<8x128xf32> to vector<8x32xf32>
    %383 = vector.extract_strided_slice %380 {offsets = [0, 64], sizes = [8, 32], strides = [1, 1]} : vector<8x128xf32> to vector<8x32xf32>
    %384 = vector.extract_strided_slice %379 {offsets = [0, 96], sizes = [8, 32], strides = [1, 1]} : vector<8x128xf32> to vector<8x32xf32>
    %385 = arith.mulf %382, %365 : vector<8x32xf32>
    %386 = arith.mulf %381, %383 : vector<8x32xf32>
    %387 = arith.addf %385, %386 : vector<8x32xf32>
    %388 = math.tanh %387 : vector<8x32xf32>
    %389 = arith.mulf %384, %388 : vector<8x32xf32>
    %c8_i32_139 = arith.constant 8 : i32
    %c0_140 = arith.constant 0 : index
    %c0_141 = arith.constant 0 : index
    %390 = vector.load %arg7[%c0_140, %c0_141] : memref<1x32xf32, #tpu.memory_space<vmem>>, vector<1x32xf32>
    %391 = vector.broadcast %390 : vector<1x32xf32> to vector<8x32xf32>
    %392 = arith.mulf %389, %391 : vector<8x32xf32>
    %cst_142 = arith.constant dense<0.000000e+00> : vector<8xf32>
    %393 = vector.multi_reduction <add>, %392, %cst_142 [1] : vector<8x32xf32> to vector<8xf32>
    %394 = vector.shape_cast %393 : vector<8xf32> to vector<8x1xf32>
    %c0_143 = arith.constant 0 : index
    %c0_144 = arith.constant 0 : index
    %395 = vector.load %arg8[%c0_143, %c0_144] : memref<1x1xf32, #tpu.memory_space<vmem>>, vector<1x1xf32>
    %396 = vector.broadcast %395 : vector<1x1xf32> to vector<8x1xf32>
    %397 = arith.addf %394, %396 : vector<8x1xf32>
    %c0_145 = arith.constant 0 : index
    %c0_146 = arith.constant 0 : index
    %398 = vector.load %arg11[%c0_145, %c0_146] : memref<8x1xf32, #tpu.memory_space<vmem>>, vector<8x1xf32>
    tpu.vector_store %arg11[%c0_145, %c0_146], %397 {strides = array<i32>} : memref<8x1xf32, #tpu.memory_space<vmem>>, vector<8x1xf32>,
    return
  }
}

</mosaic_0001>

<bundles_post_ra>
// kernel: forward.1
= control target key start
LH: loop header
LB: loop body
LE: loop exit
PB: predicated region body
PF: predicated region fallthrough
CT: control target
= control target key end

     0   :  { %vm57_vm0 = vcmask 130048   ;;  %v2688_v0 = vmov 0.0|0.0   ;;  %vm2689_vm1 = vmmov 0   ;;  %v2690_v4 = vmov 0.0   ;;  %s2691_s16 = smov 64   ;;  %s2692_s19 = smov 32   ;;  %s3115_s1 = inlined_call_operand.vmem [shape: f32[16,128], index: 1, kind: input, shape index: {}]   ;;  %s3116_s2 = inlined_call_operand.vmem [shape: f32[32,128], index: 2, kind: input, shape index: {}]   ;;  %s3117_s0 = inlined_call_operand.vmem [shape: f32[64,16], index: 0, kind: input, shape index: {}]   ;;  %s3118_s9 = inlined_call_operand.vmem [shape: f32[2,8,32], index: 9, kind: input, shape index: {}]   ;;  %s3119_s3 = inlined_call_operand.vmem [shape: f32[1,128], index: 3, kind: input, shape index: {}]   ;;  %s3120_s10 = inlined_call_operand.vmem [shape: f32[2,8,32], index: 10, kind: input, shape index: {}]   ;;  %s3121_s4 = inlined_call_operand.vmem [shape: f32[32,128], index: 4, kind: input, shape index: {}]   ;;  %s3122_s5 = inlined_call_operand.vmem [shape: f32[32,128], index: 5, kind: input, shape index: {}]   ;;  %s3123_s6 = inlined_call_operand.vmem [shape: f32[1,128], index: 6, kind: input, shape index: {}]   ;;  %s3124_s7 = inlined_call_operand.vmem [shape: f32[1,32], index: 7, kind: input, shape index: {}]   ;;  %s3125_s8 = inlined_call_operand.<no memory space> [shape: f32[1,1], index: 8, kind: input, shape index: {}]   ;;  %s3126_s11 = inlined_call_operand.vmem [shape: f32[8,1], index: 11, kind: output, shape index: {}]  }
   0x1   :  { %2450 = vmatprep.subr.bf16.mxu1 %v2688_v0  ;;  %v48_v1 = vld [vmem:[%s3115_s1] sm:$0xff]  ;;  %v49_v2 = vld [vmem:[%s3115_s1 + $0x8] sm:$0xff]  ;;  %2258 = vmatprep.mubr.msk.f32.mxu1 %vm2689_vm1, %v2690_v4  ;;  %v200_v9 = vld [vmem:[%s3116_s2 + $0x10] sm:$0xff]  ;;  %vm202_vm2 = vcmask 261120   ;;  %s2693_s28 = smov 96   ;;  %vm2072_vm3 = vcmask 7168  }
   0x2   :  { %v198_v3 = vld [vmem:[%s3116_s2] sm:$0xff]  ;;  %v2446_v5 = vpack.c.bf16 %v49_v2, %v48_v1  ;;  %v199_v6 = vld [vmem:[%s3116_s2 + $0x8] sm:$0xff]  ;;  %v201_v10 = vld [vmem:[%s3116_s2 + $0x18] sm:$0xff] }
   0x3   :  { %v40_v7 = vld [vmem:[%s3117_s0] sm:$0xff]  ;;  %v2772_v8 = vpack.c.bf16 %v199_v6, %v198_v3  ;;  %v41_v11 = vld [vmem:[%s3117_s0 + $0x8] sm:$0xff]  ;;  %v2785_v12 = vpack.c.bf16 %v201_v10, %v200_v9  ;;  %v42_v51 = vld [vmem:[%s3117_s0 + $0x10] sm:$0xff] }
   0x4   :  { %2238 = vmatprep.mubr.msk.f32.mxu0 %vm57_vm0, %v40_v7  ;;  %2447 = vmatprep.subr.bf16.mxu0 %v2446_v5  ;;  %v195_v13 = vld [vmem:[%s3118_s9] sm:$0xff]  ;;  %v43_v52 = vld [vmem:[%s3117_s0 + $0x18] sm:$0xff]  ;;  %v45_v54 = vld [vmem:[%s3117_s0 + $0x28] sm:$0xff] }
   0x5   :  { %2452 = vmatpush3.bf16.msra.mxu1 %v2772_v8  ;;  %2449 = vmatpush3.bf16.msra.mxu0 %v2446_v5  ;;  %v2809_v14 = vld [vmem:[%s3119_s3] ss:$0 sm:$0xff]  ;;  %v46_v55 = vld [vmem:[%s3117_s0 + $0x30] sm:$0xff]  ;;  %v47_v56 = vld [vmem:[%s3117_s0 + $0x38] sm:$0xff] }
   0x6   :  { %2453 = vmatprep.subr.bf16.mxu1 %v2688_v0  ;;  %2462 = vmatprep.subr.bf16.mxu0 %v2688_v0  ;;  %v196_v22 = vld [vmem:[%s3120_s10] sm:$0xff] }
   0x7   :  { %v44_v53 = vld [vmem:[%s3117_s0 + $0x20] sm:$0xff] }
   0x8   :  { %2239 = vmatmul.mubr.msk.f32.vlgmr.msra.gmra.mrb[0].mxu0 %vm57_vm0, %v41_v11 }
   0x9   :  { %2455 = vmatpush3.bf16.msra.mxu1 %v2785_v12  ;;  %2464 = vmatpush3.bf16.msra.mxu0 %v2772_v8 }
   0xa   :  { %2456 = vmatprep.subr.bf16.mxu1 %v2688_v0  ;;  %2465 = vmatprep.subr.bf16.mxu0 %v2688_v0 }
   0xb   :  { %2241 = vmatprep.mubr.msk.f32.mxu0 %vm57_vm0, %v42_v51 }
   0xc   :  { %2259 = vmatmul.mubr.msk.f32.vlgmr.msra.gmra.mrb[0].mxu1 %vm202_vm2, %v195_v13  ;;  %2242 = vmatmul.mubr.msk.f32.gmra.mrb[2].mxu0 %vm57_vm0, %v43_v52 }
   0xd   :  { %2458 = vmatpush3.bf16.msra.mxu1 %v2772_v8  ;;  %2269 = vmatprep.mubr.msk.f32.mxu1 %vm2689_vm1, %v2690_v4 }
   0xe   :  { %2459 = vmatprep.subr.bf16.mxu1 %v2688_v0  ;;  %2467 = vmatpush3.bf16.msra.mxu0 %v2785_v12 }
   0xf   :  { %2474 = vmatprep.subr.bf16.mxu0 %v2688_v0  ;;  %2244 = vmatprep.mubr.msk.f32.mxu0 %vm57_vm0, %v44_v53 }
  0x10   :  { %2245 = vmatmul.mubr.msk.f32.gmra.mrb[4].mxu0 %vm57_vm0, %v45_v54 }
  0x11   :  { %2461 = vmatpush3.bf16.msra.mxu1 %v2785_v12  ;;  %2247 = vmatprep.mubr.msk.f32.mxu0 %vm57_vm0, %v46_v55 }
  0x12   :  { %2468 = vmatprep.subr.bf16.mxu1 %v2688_v0 }
  0x14   :  { %2248 = vmatmul.mubr.msk.f32.gmra.mrb[6].mxu0 %vm57_vm0, %v47_v56 }
  0x15   :  { %2280 = vmatprep.mubr.msk.f32.mxu0 %vm2689_vm1, %v2690_v4 }
  0xdb   :  { %v2240_v15 = vpop.f32.mrb[0].mxu0 }
  0xdc   :  { %v148_v16 = vpop.f32.mrb[1].mxu0  ;;  %v154_v37 = vadd.f32 %v2240_v15, %v2809_v14 }
  0xdd   :  { %v149_v17 = vadd.f32 %v2809_v14, %v148_v16 }
  0xdf   :  { %v272_v18 = vpop.f32.mrb[0].mxu1  ;;  %v2243_v60 = vpop.f32.mrb[2].mxu0 }
  0xe0   :  { %v276_v19 = vadd.f32 %v272_v18, %v149_v17  ;;  %v2260_v20 = vpop.f32.mrb[1].mxu1  ;;  %v158_v61 = vpop.f32.mrb[3].mxu0 }
  0xe1   :  { %v159_v5 = vadd.f32 %v2809_v14, %v158_v61 }
  0xe2   :  { %2560 = vtanh.f32 %v276_v19  ;;  %v2088_v23 = vmul.f32 -1.442695, %v276_v19 }
  0xe3   :  { %v2859_v62 = vpop.f32.mrb[4].mxu0 }
  0xe4   :  { %2562 = vpow2.f32 %v2088_v23  ;;  %v2861_v63 = vpop.f32.mrb[5].mxu0 }
  0xe7   :  { %v2863_v1 = vpop.f32.mrb[6].mxu0 }
  0xe8   :  { %v2865_v2 = vpop.f32.mrb[7].mxu0 }
  0xec   :  { %v2561_v21 = vpop.eup %2560 }
  0xed   :  { %290 = vrot.lane.b32.xlu0 %v2561_v21, %s2691_s16 }
  0xee   :  { %v2563_v24 = vpop.eup %2562 }
  0xef   :  { %v280_v25 = vadd.f32 1.0, %v2563_v24 }
  0xf1   :  { %285 = vrot.lane.b32.xlu0 %v196_v22, %s2692_s19  ;;  %2564 = vrcp.f32 %v280_v25 }
  0xfb   :  { %v2565_v26 = vpop.eup %2564 }
 0x15f   :  { %v291_v27 = vpop.permute.xlu0 %290 }
 0x160   :  { %v293_v28 = vmul.f32 %v2565_v26, %v291_v27 }
 0x162   :  { %295 = vrot.lane.b32.xlu1 %v293_v28, %s2692_s19 }
 0x163   :  { %v286_v29 = vpop.permute.xlu0 %285 }
 0x164   :  { %v288_v30 = vmul.f32 %v2565_v26, %v286_v29 }
 0x1d4   :  { %v296_v31 = vpop.permute.xlu1 %295 }
 0x1d5   :  { %v298_v32 = vadd.f32 %v296_v31, %v288_v30 }
 0x1d7   :  { %2566 = vtanh.f32 %v298_v32 }
 0x1e1   :  { %v2567_v33 = vpop.eup %2566 }
 0x1e2   :  { %301 = vrot.lane.b32.xlu1 %v2567_v33, %s2691_s16 }
 0x254   :  { %v302_v34 = vpop.permute.xlu1 %301 }
 0x255   :  { %v304_v35 = vmul.f32 %v2565_v26, %v302_v34  ;;  %v164_v26 = vadd.f32 %v2243_v60, %v2809_v14 }
 0x257   :  { %306 = vrot.lane.b32.xlu0 %v304_v35, %s2692_s19 }
 0x2c9   :  { %v307_v36 = vpop.permute.xlu0 %306 }
 0x2ca   :  { %309 = vst.msk [vmem:[#allocation3] sm:$0xff] %vm202_vm2, %v307_v36  ;;  %2270 = vmatmul.mubr.msk.f32.vlgmr.msra.gmra.mrb[2].mxu1 %vm202_vm2, %v307_v36 }
 0x2cb   :  { %2470 = vmatpush3.bf16.msra.mxu1 %v2772_v8  ;;  %2291 = vmatprep.mubr.msk.f32.mxu1 %vm2689_vm1, %v2690_v4 }
 0x2cc   :  { %2471 = vmatprep.subr.bf16.mxu1 %v2688_v0 }
 0x2cf   :  { %2473 = vmatpush3.bf16.msra.mxu1 %v2785_v12 }
 0x2d0   :  { %2480 = vmatprep.subr.bf16.mxu1 %v2688_v0 }
 0x39d   :  { %v384_v38 = vpop.f32.mrb[2].mxu1 }
 0x39e   :  { %v388_v39 = vadd.f32 %v384_v38, %v154_v37  ;;  %v2271_v40 = vpop.f32.mrb[3].mxu1 }
 0x3a0   :  { %2568 = vtanh.f32 %v388_v39  ;;  %v2090_v42 = vmul.f32 -1.442695, %v388_v39 }
 0x3a2   :  { %2570 = vpow2.f32 %v2090_v42 }
 0x3aa   :  { %v2569_v41 = vpop.eup %2568 }
 0x3ab   :  { %398 = vrot.lane.b32.xlu1 %v2569_v41, %s2691_s16 }
 0x3ac   :  { %v2571_v43 = vpop.eup %2570 }
 0x3ad   :  { %v392_v44 = vadd.f32 1.0, %v2571_v43 }
 0x3af   :  { %2572 = vrcp.f32 %v392_v44  ;;  %v169_v44 = vadd.f32 %v2809_v14, %v2861_v63  ;;  %v174_v63 = vadd.f32 %v2859_v62, %v2809_v14 }
 0x3b9   :  { %v2573_v45 = vpop.eup %2572 }
 0x3ba   :  { %v396_v48 = vmul.f32 %v2573_v45, %v298_v32 }
 0x41d   :  { %v399_v46 = vpop.permute.xlu1 %398 }
 0x41e   :  { %v401_v47 = vmul.f32 %v2573_v45, %v399_v46 }
 0x420   :  { %403 = vrot.lane.b32.xlu0 %v401_v47, %s2692_s19 }
 0x492   :  { %v404_v49 = vpop.permute.xlu0 %403 }
 0x493   :  { %v406_v50 = vadd.f32 %v404_v49, %v396_v48 }
 0x495   :  { %2574 = vtanh.f32 %v406_v50 }
 0x49f   :  { %v2575_v57 = vpop.eup %2574 }
 0x4a0   :  { %409 = vrot.lane.b32.xlu1 %v2575_v57, %s2691_s16 }
 0x512   :  { %v410_v58 = vpop.permute.xlu1 %409 }
 0x513   :  { %v412_v59 = vmul.f32 %v2573_v45, %v410_v58 }
 0x515   :  { %414 = vrot.lane.b32.xlu0 %v412_v59, %s2692_s19 }
 0x587   :  { %v415_v3 = vpop.permute.xlu0 %414 }
 0x588   :  { %418 = vst.msk [vmem:[#allocation3 + $0x8] sm:$0xff] %vm202_vm2, %v415_v3  ;;  %2281 = vmatmul.mubr.msk.f32.vlgmr.msra.gmra.mrb[8].mxu0 %vm202_vm2, %v415_v3 }
 0x589   :  { %2476 = vmatpush3.bf16.msra.mxu0 %v2772_v8  ;;  %2302 = vmatprep.mubr.msk.f32.mxu0 %vm2689_vm1, %v2690_v4 }
 0x58a   :  { %2477 = vmatprep.subr.bf16.mxu0 %v2688_v0 }
 0x58d   :  { %2479 = vmatpush3.bf16.msra.mxu0 %v2785_v12 }
 0x58e   :  { %2486 = vmatprep.subr.bf16.mxu0 %v2688_v0 }
 0x65b   :  { %v493_v6 = vpop.f32.mrb[8].mxu0 }
 0x65c   :  { %v497_v7 = vadd.f32 %v493_v6, %v159_v5  ;;  %v2282_v9 = vpop.f32.mrb[9].mxu0 }
 0x65e   :  { %2576 = vtanh.f32 %v497_v7  ;;  %v2092_v11 = vmul.f32 -1.442695, %v497_v7 }
 0x660   :  { %2578 = vpow2.f32 %v2092_v11 }
 0x668   :  { %v2577_v10 = vpop.eup %2576 }
 0x669   :  { %507 = vrot.lane.b32.xlu1 %v2577_v10, %s2691_s16 }
 0x66a   :  { %v2579_v13 = vpop.eup %2578 }
 0x66b   :  { %v501_v15 = vadd.f32 1.0, %v2579_v13 }
 0x66d   :  { %2580 = vrcp.f32 %v501_v15 }
 0x677   :  { %v2581_v16 = vpop.eup %2580 }
 0x678   :  { %v505_v19 = vmul.f32 %v2581_v16, %v406_v50 }
 0x6db   :  { %v508_v17 = vpop.permute.xlu1 %507 }
 0x6dc   :  { %v510_v18 = vmul.f32 %v2581_v16, %v508_v17  ;;  %v1081_v17 = vld [vmem:[%s3121_s4] sm:$0xff] }
 0x6de   :  { %512 = vrot.lane.b32.xlu0 %v510_v18, %s2692_s19  ;;  %v1082_v18 = vld [vmem:[%s3121_s4 + $0x8] sm:$0xff] }
 0x750   :  { %v513_v20 = vpop.permute.xlu0 %512 }
 0x751   :  { %v515_v21 = vadd.f32 %v513_v20, %v505_v19  ;;  %v2498_v19 = vpack.c.bf16 %v1082_v18, %v1081_v17 }
 0x753   :  { %2582 = vtanh.f32 %v515_v21 }
 0x75d   :  { %v2583_v22 = vpop.eup %2582 }
 0x75e   :  { %518 = vrot.lane.b32.xlu1 %v2583_v22, %s2691_s16 }
 0x7d0   :  { %v519_v23 = vpop.permute.xlu1 %518 }
 0x7d1   :  { %v521_v24 = vmul.f32 %v2581_v16, %v519_v23  ;;  %v1083_v23 = vld [vmem:[%s3121_s4 + $0x10] sm:$0xff] }
 0x7d3   :  { %523 = vrot.lane.b32.xlu0 %v521_v24, %s2692_s19  ;;  %v1084_v24 = vld [vmem:[%s3121_s4 + $0x18] sm:$0xff] }
 0x845   :  { %v524_v25 = vpop.permute.xlu0 %523 }
 0x846   :  { %527 = vst.msk [vmem:[#allocation3 + $0x10] sm:$0xff] %vm202_vm2, %v524_v25  ;;  %2292 = vmatmul.mubr.msk.f32.vlgmr.msra.gmra.mrb[4].mxu1 %vm202_vm2, %v524_v25  ;;  %v2502_v25 = vpack.c.bf16 %v1084_v24, %v1083_v23 }
 0x847   :  { %2482 = vmatpush3.bf16.msra.mxu1 %v2772_v8  ;;  %2313 = vmatprep.mubr.msk.f32.mxu1 %vm2689_vm1, %v2690_v4 }
 0x848   :  { %2483 = vmatprep.subr.bf16.mxu1 %v2688_v0 }
 0x84b   :  { %2485 = vmatpush3.bf16.msra.mxu1 %v2785_v12 }
 0x84c   :  { %2492 = vmatprep.subr.bf16.mxu1 %v2688_v0 }
 0x919   :  { %v602_v27 = vpop.f32.mrb[4].mxu1 }
 0x91a   :  { %v606_v28 = vadd.f32 %v602_v27, %v164_v26  ;;  %v2293_v29 = vpop.f32.mrb[5].mxu1  ;;  %v1073_v27 = vld [vmem:[#allocation3] sm:$0xff] }
 0x91b   :  { %v1075_v29 = vld [vmem:[#allocation3 + $0x10] sm:$0xff] }
 0x91c   :  { %2584 = vtanh.f32 %v606_v28  ;;  %v2094_v31 = vmul.f32 -1.442695, %v606_v28  ;;  %v1074_v28 = vld [vmem:[#allocation3 + $0x8] sm:$0xff] }
 0x91e   :  { %2586 = vpow2.f32 %v2094_v31 }
 0x926   :  { %v2585_v30 = vpop.eup %2584 }
 0x927   :  { %616 = vrot.lane.b32.xlu1 %v2585_v30, %s2691_s16 }
 0x928   :  { %v2587_v32 = vpop.eup %2586 }
 0x929   :  { %v610_v33 = vadd.f32 1.0, %v2587_v32 }
 0x92b   :  { %2588 = vrcp.f32 %v610_v33  ;;  %v179_v33 = vadd.f32 %v2809_v14, %v2865_v2 }
 0x935   :  { %v2589_v34 = vpop.eup %2588 }
 0x936   :  { %v614_v37 = vmul.f32 %v2589_v34, %v515_v21 }
 0x999   :  { %v617_v35 = vpop.permute.xlu1 %616 }
 0x99a   :  { %v619_v36 = vmul.f32 %v2589_v34, %v617_v35 }
 0x99c   :  { %621 = vrot.lane.b32.xlu0 %v619_v36, %s2692_s19 }
 0xa0e   :  { %v622_v38 = vpop.permute.xlu0 %621 }
 0xa0f   :  { %v624_v39 = vadd.f32 %v622_v38, %v614_v37 }
 0xa11   :  { %2590 = vtanh.f32 %v624_v39 }
 0xa1b   :  { %v2591_v40 = vpop.eup %2590 }
 0xa1c   :  { %627 = vrot.lane.b32.xlu1 %v2591_v40, %s2691_s16 }
 0xa8e   :  { %v628_v41 = vpop.permute.xlu1 %627 }
 0xa8f   :  { %v630_v42 = vmul.f32 %v2589_v34, %v628_v41 }
 0xa91   :  { %632 = vrot.lane.b32.xlu0 %v630_v42, %s2692_s19 }
 0xb03   :  { %v633_v43 = vpop.permute.xlu0 %632 }
 0xb04   :  { %636 = vst.msk [vmem:[#allocation3 + $0x18] sm:$0xff] %vm202_vm2, %v633_v43  ;;  %2303 = vmatmul.mubr.msk.f32.vlgmr.msra.gmra.mrb[10].mxu0 %vm202_vm2, %v633_v43 }
 0xb05   :  { %2488 = vmatpush3.bf16.msra.mxu0 %v2772_v8  ;;  %2324 = vmatprep.mubr.msk.f32.mxu0 %vm2689_vm1, %v2690_v4 }
 0xb06   :  { %2489 = vmatprep.subr.bf16.mxu0 %v2688_v0 }
 0xb09   :  { %2491 = vmatpush3.bf16.msra.mxu0 %v2785_v12 }
 0xb0a   :  { %2499 = vmatprep.subr.bf16.mxu0 %v2498_v19 }
 0xb0b   :  { %v1076_v30 = vld [vmem:[#allocation3 + $0x18] sm:$0xff] }
 0xbd7   :  { %v711_v45 = vpop.f32.mrb[10].mxu0 }
 0xbd8   :  { %v715_v46 = vadd.f32 %v711_v45, %v169_v44  ;;  %v2304_v47 = vpop.f32.mrb[11].mxu0 }
 0xbda   :  { %2592 = vtanh.f32 %v715_v46  ;;  %v2096_v49 = vmul.f32 -1.442695, %v715_v46 }
 0xbdc   :  { %2594 = vpow2.f32 %v2096_v49 }
 0xbe4   :  { %v2593_v48 = vpop.eup %2592 }
 0xbe5   :  { %725 = vrot.lane.b32.xlu1 %v2593_v48, %s2691_s16 }
 0xbe6   :  { %v2595_v50 = vpop.eup %2594 }
 0xbe7   :  { %v719_v51 = vadd.f32 1.0, %v2595_v50 }
 0xbe9   :  { %2596 = vrcp.f32 %v719_v51 }
 0xbf3   :  { %v2597_v52 = vpop.eup %2596 }
 0xbf4   :  { %v723_v55 = vmul.f32 %v2597_v52, %v624_v39 }
 0xc57   :  { %v726_v53 = vpop.permute.xlu1 %725 }
 0xc58   :  { %v728_v54 = vmul.f32 %v2597_v52, %v726_v53  ;;  %v1234_v53 = vld [vmem:[%s3122_s5] sm:$0xff] }
 0xc5a   :  { %730 = vrot.lane.b32.xlu0 %v728_v54, %s2692_s19  ;;  %v1235_v54 = vld [vmem:[%s3122_s5 + $0x8] sm:$0xff] }
 0xccc   :  { %v731_v56 = vpop.permute.xlu0 %730 }
 0xccd   :  { %v733_v57 = vadd.f32 %v731_v56, %v723_v55  ;;  %v2965_v55 = vpack.c.bf16 %v1235_v54, %v1234_v53  ;;  %v1236_v56 = vld [vmem:[%s3122_s5 + $0x10] sm:$0xff] }
 0xccf   :  { %2598 = vtanh.f32 %v733_v57 }
 0xcd9   :  { %v2599_v58 = vpop.eup %2598 }
 0xcda   :  { %736 = vrot.lane.b32.xlu1 %v2599_v58, %s2691_s16 }
 0xd4c   :  { %v737_v59 = vpop.permute.xlu1 %736 }
 0xd4d   :  { %v739_v60 = vmul.f32 %v2597_v52, %v737_v59 }
 0xd4f   :  { %741 = vrot.lane.b32.xlu0 %v739_v60, %s2692_s19 }
 0xdc1   :  { %v742_v61 = vpop.permute.xlu0 %741 }
 0xdc2   :  { %745 = vst.msk [vmem:[#allocation3 + $0x20] sm:$0xff] %vm202_vm2, %v742_v61  ;;  %2314 = vmatmul.mubr.msk.f32.vlgmr.msra.gmra.mrb[6].mxu1 %vm202_vm2, %v742_v61  ;;  %v2113_v61 = vld [vmem:[%s3120_s10 + $0x8] sm:$0xff] }
 0xdc3   :  { %2494 = vmatpush3.bf16.msra.mxu1 %v2772_v8  ;;  %2335 = vmatprep.mubr.msk.f32.mxu1 %vm2689_vm1, %v2690_v4 }
 0xdc4   :  { %2495 = vmatprep.subr.bf16.mxu1 %v2688_v0 }
 0xdc7   :  { %2497 = vmatpush3.bf16.msra.mxu1 %v2785_v12 }
 0xdc8   :  { %2506 = vmatprep.subr.bf16.mxu1 %v2688_v0 }
 0xdc9   :  { %v1077_v31 = vld [vmem:[#allocation3 + $0x20] sm:$0xff] }
 0xe95   :  { %v820_v3 = vpop.f32.mrb[6].mxu1 }
 0xe96   :  { %v824_v5 = vadd.f32 %v820_v3, %v174_v63  ;;  %v2315_v6 = vpop.f32.mrb[7].mxu1  ;;  %v2112_v3 = vld [vmem:[%s3118_s9 + $0x8] sm:$0xff] }
 0xe97   :  { %v184_v6 = vadd.f32 %v2863_v1, %v2809_v14 }
 0xe98   :  { %2600 = vtanh.f32 %v824_v5  ;;  %v2098_v8 = vmul.f32 -1.442695, %v824_v5 }
 0xe9a   :  { %2602 = vpow2.f32 %v2098_v8 }
 0xea2   :  { %v2601_v7 = vpop.eup %2600 }
 0xea3   :  { %834 = vrot.lane.b32.xlu1 %v2601_v7, %s2691_s16 }
 0xea4   :  { %v2603_v9 = vpop.eup %2602 }
 0xea5   :  { %v828_v10 = vadd.f32 1.0, %v2603_v9 }
 0xea7   :  { %2604 = vrcp.f32 %v828_v10  ;;  %v3008_v10 = vld [vmem:[%s3123_s6] ss:$0 sm:$0xff] }
 0xeb1   :  { %v2605_v11 = vpop.eup %2604 }
 0xeb2   :  { %v832_v15 = vmul.f32 %v2605_v11, %v733_v57  ;;  %v1237_v57 = vld [vmem:[%s3122_s5 + $0x18] sm:$0xff] }
 0xeb3   :  { %v2975_v58 = vpack.c.bf16 %v1237_v57, %v1236_v56 }
 0xf15   :  { %v835_v13 = vpop.permute.xlu1 %834 }
 0xf16   :  { %v837_v12 = vmul.f32 %v2605_v11, %v835_v13 }
 0xf18   :  { %839 = vrot.lane.b32.xlu0 %v837_v12, %s2692_s19 }
 0xf8a   :  { %v840_v16 = vpop.permute.xlu0 %839 }
 0xf8b   :  { %v842_v62 = vadd.f32 %v840_v16, %v832_v15 }
 0xf8d   :  { %2606 = vtanh.f32 %v842_v62 }
 0xf97   :  { %v2607_v20 = vpop.eup %2606 }
 0xf98   :  { %845 = vrot.lane.b32.xlu1 %v2607_v20, %s2691_s16 }
0x100a   :  { %v846_v21 = vpop.permute.xlu1 %845 }
0x100b   :  { %v848_v22 = vmul.f32 %v2605_v11, %v846_v21 }
0x100d   :  { %850 = vrot.lane.b32.xlu0 %v848_v22, %s2692_s19 }
0x107f   :  { %v851_v26 = vpop.permute.xlu0 %850 }
0x1080   :  { %854 = vst.msk [vmem:[#allocation3 + $0x28] sm:$0xff] %vm202_vm2, %v851_v26  ;;  %2325 = vmatmul.mubr.msk.f32.vlgmr.msra.gmra.mrb[12].mxu0 %vm202_vm2, %v851_v26 }
0x1081   :  { %2501 = vmatpush3.bf16.msra.mxu0 %v2498_v19  ;;  %2346 = vmatprep.mubr.msk.f32.mxu0 %vm202_vm2, %v1073_v27 }
0x1082   :  { %2503 = vmatprep.subr.bf16.mxu0 %v2502_v25 }
0x1085   :  { %2505 = vmatpush3.bf16.msra.mxu0 %v2502_v25 }
0x1086   :  { %2518 = vmatprep.subr.bf16.mxu0 %v2688_v0 }
0x1087   :  { %v1078_v32 = vld [vmem:[#allocation3 + $0x28] sm:$0xff] }
0x1088   :  { %2347 = vmatmul.mubr.msk.f32.vlgmr.msra.gmra.mrb[14].mxu0 %vm202_vm2, %v1074_v28 }
0x1089   :  { %2349 = vmatprep.mubr.msk.f32.mxu0 %vm202_vm2, %v1075_v29  ;;  %2520 = vmatpush3.bf16.msra.mxu0 %v2965_v55 }
0x108a   :  { %2521 = vmatprep.subr.bf16.mxu0 %v2688_v0 }
0x108c   :  { %2350 = vmatmul.mubr.msk.f32.gmra.mrb[16].mxu0 %vm202_vm2, %v1076_v30 }
0x108d   :  { %2352 = vmatprep.mubr.msk.f32.mxu0 %vm202_vm2, %v1077_v31  ;;  %2523 = vmatpush3.bf16.msra.mxu0 %v2975_v58 }
0x108e   :  { %2530 = vmatprep.subr.bf16.mxu0 %v2688_v0 }
0x1090   :  { %2353 = vmatmul.mubr.msk.f32.gmra.mrb[18].mxu0 %vm202_vm2, %v1078_v32 }
0x1153   :  { %v929_v34 = vpop.f32.mrb[12].mxu0 }
0x1154   :  { %v933_v35 = vadd.f32 %v929_v34, %v179_v33  ;;  %v2326_v36 = vpop.f32.mrb[13].mxu0 }
0x1156   :  { %2608 = vtanh.f32 %v933_v35  ;;  %v2100_v44 = vmul.f32 -1.442695, %v933_v35 }
0x1158   :  { %2610 = vpow2.f32 %v2100_v44 }
0x115b   :  { %v2943_v37 = vpop.f32.mrb[14].mxu0 }
0x115c   :  { %v1182_v38 = vpop.f32.mrb[15].mxu0 }
0x115d   :  { %v1183_v11 = vadd.f32 %v3008_v10, %v1182_v38 }
0x115f   :  { %v2945_v39 = vpop.f32.mrb[16].mxu0 }
0x1160   :  { %v2609_v40 = vpop.eup %2608  ;;  %v2947_v41 = vpop.f32.mrb[17].mxu0 }
0x1161   :  { %943 = vrot.lane.b32.xlu1 %v2609_v40, %s2691_s16 }
0x1162   :  { %v2611_v2 = vpop.eup %2610 }
0x1163   :  { %v2950_v42 = vpop.f32.mrb[18].mxu0  ;;  %v937_v45 = vadd.f32 1.0, %v2611_v2 }
0x1164   :  { %v2952_v43 = vpop.f32.mrb[19].mxu0 }
0x1165   :  { %2612 = vrcp.f32 %v937_v45  ;;  %v1188_v45 = vadd.f32 %v2943_v37, %v3008_v10 }
0x116f   :  { %v2613_v46 = vpop.eup %2612 }
0x1170   :  { %v941_v49 = vmul.f32 %v2613_v46, %v842_v62 }
0x11d3   :  { %v944_v47 = vpop.permute.xlu1 %943 }
0x11d4   :  { %v946_v48 = vmul.f32 %v2613_v46, %v944_v47 }
0x11d6   :  { %948 = vrot.lane.b32.xlu0 %v946_v48, %s2692_s19 }
0x1248   :  { %v949_v50 = vpop.permute.xlu0 %948 }
0x1249   :  { %v2955_v51 = vadd.f32 %v949_v50, %v941_v49 }
0x124b   :  { %2614 = vtanh.f32 %v2955_v51 }
0x1255   :  { %v2615_v52 = vpop.eup %2614 }
0x1256   :  { %954 = vrot.lane.b32.xlu1 %v2615_v52, %s2691_s16 }
0x12c8   :  { %v955_v59 = vpop.permute.xlu1 %954 }
0x12c9   :  { %v957_v60 = vmul.f32 %v2613_v46, %v955_v59 }
0x12cb   :  { %959 = vrot.lane.b32.xlu0 %v957_v60, %s2692_s19 }
0x12cf   :  { %1320 = vrot.lane.b32.xlu0 %v2113_v61, %s2692_s19 }
0x133d   :  { %v960_v63 = vpop.permute.xlu0 %959 }
0x133e   :  { %963 = vst.msk [vmem:[#allocation3 + $0x30] sm:$0xff] %vm202_vm2, %v960_v63  ;;  %2336 = vmatmul.mubr.msk.f32.vlgmr.msra.gmra.mrb[8].mxu1 %vm202_vm2, %v960_v63 }
0x133f   :  { %2508 = vmatpush3.bf16.msra.mxu1 %v2965_v55  ;;  %2366 = vmatprep.mubr.msk.f32.mxu1 %vm2689_vm1, %v2690_v4 }
0x1340   :  { %2509 = vmatprep.subr.bf16.mxu1 %v2688_v0 }
0x1341   :  { %v1321_v20 = vpop.permute.xlu0 %1320 }
0x1343   :  { %2511 = vmatpush3.bf16.msra.mxu1 %v2975_v58 }
0x1344   :  { %2512 = vmatprep.subr.bf16.mxu1 %v2688_v0 }
0x1345   :  { %v1079_v5 = vld [vmem:[#allocation3 + $0x30] sm:$0xff] }
0x1346   :  { %2367 = vmatmul.mubr.msk.f32.vlgmr.msra.gmra.mrb[10].mxu1 %vm202_vm2, %v2112_v3  ;;  %2355 = vmatprep.mubr.msk.f32.mxu0 %vm202_vm2, %v1079_v5 }
0x1347   :  { %2514 = vmatpush3.bf16.msra.mxu1 %v2965_v55  ;;  %2377 = vmatprep.mubr.msk.f32.mxu1 %vm2689_vm1, %v2690_v4 }
0x1348   :  { %2515 = vmatprep.subr.bf16.mxu1 %v2688_v0 }
0x134b   :  { %2517 = vmatpush3.bf16.msra.mxu1 %v2975_v58 }
0x134c   :  { %2524 = vmatprep.subr.bf16.mxu1 %v2688_v0 }
0x1411   :  { %v1038_v7 = vpop.f32.mrb[8].mxu1 }
0x1412   :  { %v1042_v8 = vadd.f32 %v1038_v7, %v184_v6  ;;  %v2337_v9 = vpop.f32.mrb[9].mxu1 }
0x1413   :  { %v1193_v9 = vadd.f32 %v3008_v10, %v2947_v41 }
0x1414   :  { %v2102_v26 = vmul.f32 -1.442695, %v1042_v8 }
0x1419   :  { %v1307_v13 = vpop.f32.mrb[10].mxu1 }
0x141a   :  { %v1311_v12 = vadd.f32 %v1307_v13, %v1183_v11  ;;  %v2368_v15 = vpop.f32.mrb[11].mxu1 }
0x141c   :  { %2616 = vtanh.f32 %v1311_v12  ;;  %v2115_v62 = vmul.f32 -1.442695, %v1311_v12 }
0x141e   :  { %2618 = vpow2.f32 %v2115_v62 }
0x1426   :  { %v2617_v16 = vpop.eup %2616 }
0x1427   :  { %1325 = vrot.lane.b32.xlu1 %v2617_v16, %s2691_s16 }
0x1428   :  { %v2619_v14 = vpop.eup %2618 }
0x1429   :  { %v1315_v1 = vadd.f32 1.0, %v2619_v14 }
0x142b   :  { %2620 = vrcp.f32 %v1315_v1 }
0x1435   :  { %v2621_v17 = vpop.eup %2620 }
0x1436   :  { %v1323_v21 = vmul.f32 %v2621_v17, %v1321_v20 }
0x1499   :  { %v1326_v18 = vpop.permute.xlu1 %1325 }
0x149a   :  { %v1328_v19 = vmul.f32 %v2621_v17, %v1326_v18 }
0x149c   :  { %1330 = vrot.lane.b32.xlu1 %v1328_v19, %s2692_s19 }
0x150e   :  { %v1331_v22 = vpop.permute.xlu1 %1330 }
0x150f   :  { %v1333_v23 = vadd.f32 %v1331_v22, %v1323_v21 }
0x1511   :  { %2622 = vtanh.f32 %v1333_v23 }
0x1512   :  { %2624 = vtanh.f32 %v1042_v8 }
0x1513   :  { %2626 = vpow2.f32 %v2102_v26 }
0x151b   :  { %v2623_v24 = vpop.eup %2622 }
0x151c   :  { %1336 = vrot.lane.b32.xlu0 %v2623_v24, %s2691_s16  ;;  %v2625_v25 = vpop.eup %2624 }
0x151d   :  { %v2627_v27 = vpop.eup %2626 }
0x151e   :  { %v1046_v28 = vadd.f32 1.0, %v2627_v27 }
0x1520   :  { %1052 = vrot.lane.b32.xlu0 %v2625_v25, %s2691_s16  ;;  %2628 = vrcp.f32 %v1046_v28  ;;  %v1198_v25 = vadd.f32 %v2945_v39, %v3008_v10 }
0x152a   :  { %v2629_v31 = vpop.eup %2628 }
0x152b   :  { %v1050_v35 = vmul.f32 %v2629_v31, %v2955_v51 }
0x158e   :  { %v1337_v29 = vpop.permute.xlu0 %1336 }
0x158f   :  { %v1339_v30 = vmul.f32 %v2621_v17, %v1337_v29 }
0x1591   :  { %1342 = vrot.lane.b32.xlu1 %v1339_v30, %s2692_s19 }
0x1592   :  { %v1053_v32 = vpop.permute.xlu0 %1052 }
0x1593   :  { %v1055_v33 = vmul.f32 %v2629_v31, %v1053_v32 }
0x1595   :  { %1057 = vrot.lane.b32.xlu0 %v1055_v33, %s2692_s19 }
0x1603   :  { %v1343_v34 = vpop.permute.xlu1 %1342 }
0x1604   :  { %2378 = vmatmul.mubr.msk.f32.vlgmr.msra.gmra.mrb[12].mxu1 %vm202_vm2, %v1343_v34 }
0x1605   :  { %2526 = vmatpush3.bf16.msra.mxu1 %v2965_v55  ;;  %2399 = vmatprep.mubr.msk.f32.mxu1 %vm2689_vm1, %v2690_v4 }
0x1606   :  { %2527 = vmatprep.subr.bf16.mxu1 %v2688_v0 }
0x1607   :  { %v1058_v36 = vpop.permute.xlu0 %1057 }
0x1608   :  { %v1060_v38 = vadd.f32 %v1058_v36, %v1050_v35 }
0x1609   :  { %2529 = vmatpush3.bf16.msra.mxu1 %v2975_v58 }
0x160a   :  { %2630 = vtanh.f32 %v1060_v38  ;;  %2536 = vmatprep.subr.bf16.mxu1 %v2688_v0 }
0x1614   :  { %v2631_v40 = vpop.eup %2630 }
0x1615   :  { %1063 = vrot.lane.b32.xlu0 %v2631_v40, %s2691_s16 }
0x1687   :  { %v1064_v44 = vpop.permute.xlu0 %1063 }
0x1688   :  { %v1066_v2 = vmul.f32 %v2629_v31, %v1064_v44 }
0x168a   :  { %1068 = vrot.lane.b32.xlu0 %v1066_v2, %s2692_s19 }
0x16d7   :  { %v1412_v46 = vpop.f32.mrb[12].mxu1 }
0x16d8   :  { %v1416_v47 = vadd.f32 %v1412_v46, %v1188_v45  ;;  %v2379_v48 = vpop.f32.mrb[13].mxu1  ;;  %v1203_v46 = vadd.f32 %v3008_v10, %v2952_v43 }
0x16da   :  { %2632 = vtanh.f32 %v1416_v47  ;;  %v2117_v52 = vmul.f32 -1.442695, %v1416_v47 }
0x16dc   :  { %2634 = vpow2.f32 %v2117_v52 }
0x16e4   :  { %v2633_v49 = vpop.eup %2632 }
0x16e5   :  { %1426 = vrot.lane.b32.xlu1 %v2633_v49, %s2691_s16 }
0x16e6   :  { %v2635_v53 = vpop.eup %2634 }
0x16e7   :  { %v1420_v37 = vadd.f32 1.0, %v2635_v53 }
0x16e9   :  { %2636 = vrcp.f32 %v1420_v37 }
0x16f3   :  { %v2637_v54 = vpop.eup %2636 }
0x16f4   :  { %v1424_v59 = vmul.f32 %v2637_v54, %v1333_v23 }
0x16fc   :  { %v1069_v50 = vpop.permute.xlu0 %1068 }
0x16fd   :  { %1072 = vst.msk [vmem:[#allocation3 + $0x38] sm:$0xff] %vm202_vm2, %v1069_v50 }
0x1704   :  { %v1080_v51 = vld [vmem:[#allocation3 + $0x38] sm:$0xff] }
0x1705   :  { %2356 = vmatmul.mubr.msk.f32.gmra.mrb[20].mxu0 %vm202_vm2, %v1080_v51 }
0x1706   :  { %2388 = vmatprep.mubr.msk.f32.mxu0 %vm2689_vm1, %v2690_v4 }
0x1757   :  { %v1427_v56 = vpop.permute.xlu1 %1426 }
0x1758   :  { %v1429_v57 = vmul.f32 %v2637_v54, %v1427_v56 }
0x175a   :  { %1431 = vrot.lane.b32.xlu1 %v1429_v57, %s2692_s19 }
0x17cc   :  { %v1432_v60 = vpop.permute.xlu1 %1431 }
0x17cd   :  { %v1434_v61 = vadd.f32 %v1432_v60, %v1424_v59 }
0x17cf   :  { %2638 = vtanh.f32 %v1434_v61 }
0x17d8   :  { %v3035_v63 = vpop.f32.mrb[20].mxu0 }
0x17d9   :  { %v2639_v3 = vpop.eup %2638  ;;  %v3037_v5 = vpop.f32.mrb[21].mxu0 }
0x17da   :  { %1437 = vrot.lane.b32.xlu1 %v2639_v3, %s2691_s16 }
0x184c   :  { %v1438_v6 = vpop.permute.xlu1 %1437 }
0x184d   :  { %v1440_v7 = vmul.f32 %v2637_v54, %v1438_v6 }
0x184f   :  { %1443 = vrot.lane.b32.xlu1 %v1440_v7, %s2692_s19  ;;  %v1208_v7 = vadd.f32 %v2950_v42, %v3008_v10 }
0x18c1   :  { %v1444_v8 = vpop.permute.xlu1 %1443 }
0x18c2   :  { %2389 = vmatmul.mubr.msk.f32.vlgmr.msra.gmra.mrb[22].mxu0 %vm202_vm2, %v1444_v8 }
0x18c3   :  { %2532 = vmatpush3.bf16.msra.mxu0 %v2965_v55  ;;  %2410 = vmatprep.mubr.msk.f32.mxu0 %vm2689_vm1, %v2690_v4 }
0x18c4   :  { %2533 = vmatprep.subr.bf16.mxu0 %v2688_v0 }
0x18c7   :  { %2535 = vmatpush3.bf16.msra.mxu0 %v2975_v58 }
0x18c8   :  { %2542 = vmatprep.subr.bf16.mxu0 %v2688_v0 }
0x1995   :  { %v1513_v11 = vpop.f32.mrb[22].mxu0 }
0x1996   :  { %v1517_v13 = vadd.f32 %v1513_v11, %v1193_v9  ;;  %v2390_v12 = vpop.f32.mrb[23].mxu0 }
0x1998   :  { %2640 = vtanh.f32 %v1517_v13  ;;  %v2119_v16 = vmul.f32 -1.442695, %v1517_v13 }
0x199a   :  { %2642 = vpow2.f32 %v2119_v16 }
0x19a2   :  { %v2641_v15 = vpop.eup %2640 }
0x19a3   :  { %1527 = vrot.lane.b32.xlu0 %v2641_v15, %s2691_s16 }
0x19a4   :  { %v2643_v62 = vpop.eup %2642 }
0x19a5   :  { %v1521_v14 = vadd.f32 1.0, %v2643_v62 }
0x19a7   :  { %2644 = vrcp.f32 %v1521_v14 }
0x19b1   :  { %v2645_v1 = vpop.eup %2644 }
0x19b2   :  { %v1525_v19 = vmul.f32 %v2645_v1, %v1434_v61 }
0x1a15   :  { %v1528_v17 = vpop.permute.xlu0 %1527 }
0x1a16   :  { %v1530_v18 = vmul.f32 %v2645_v1, %v1528_v17 }
0x1a18   :  { %1532 = vrot.lane.b32.xlu1 %v1530_v18, %s2692_s19 }
0x1a8a   :  { %v1533_v20 = vpop.permute.xlu1 %1532 }
0x1a8b   :  { %v1535_v41 = vadd.f32 %v1533_v20, %v1525_v19  ;;  %v1213_v19 = vadd.f32 %v3008_v10, %v3037_v5 }
0x1a8d   :  { %2646 = vtanh.f32 %v1535_v41 }
0x1a97   :  { %v2647_v21 = vpop.eup %2646 }
0x1a98   :  { %1538 = vrot.lane.b32.xlu0 %v2647_v21, %s2691_s16 }
0x1b0a   :  { %v1539_v22 = vpop.permute.xlu0 %1538 }
0x1b0b   :  { %v1541_v23 = vmul.f32 %v2645_v1, %v1539_v22 }
0x1b0d   :  { %1544 = vrot.lane.b32.xlu1 %v1541_v23, %s2692_s19 }
0x1b7f   :  { %v1545_v24 = vpop.permute.xlu1 %1544 }
0x1b80   :  { %2400 = vmatmul.mubr.msk.f32.vlgmr.msra.gmra.mrb[14].mxu1 %vm202_vm2, %v1545_v24 }
0x1b81   :  { %2538 = vmatpush3.bf16.msra.mxu1 %v2965_v55  ;;  %2421 = vmatprep.mubr.msk.f32.mxu1 %vm2689_vm1, %v2690_v4 }
0x1b82   :  { %2539 = vmatprep.subr.bf16.mxu1 %v2688_v0 }
0x1b85   :  { %2541 = vmatpush3.bf16.msra.mxu1 %v2975_v58 }
0x1b86   :  { %2548 = vmatprep.subr.bf16.mxu1 %v2688_v0 }
0x1c53   :  { %v1614_v26 = vpop.f32.mrb[14].mxu1 }
0x1c54   :  { %v1618_v27 = vadd.f32 %v1614_v26, %v1198_v25  ;;  %v2401_v28 = vpop.f32.mrb[15].mxu1 }
0x1c56   :  { %2648 = vtanh.f32 %v1618_v27  ;;  %v2121_v30 = vmul.f32 -1.442695, %v1618_v27 }
0x1c58   :  { %2650 = vpow2.f32 %v2121_v30 }
0x1c60   :  { %v2649_v29 = vpop.eup %2648 }
0x1c61   :  { %1628 = vrot.lane.b32.xlu0 %v2649_v29, %s2691_s16 }
0x1c62   :  { %v2651_v31 = vpop.eup %2650 }
0x1c63   :  { %v1622_v32 = vadd.f32 1.0, %v2651_v31 }
0x1c65   :  { %2652 = vrcp.f32 %v1622_v32 }
0x1c6f   :  { %v2653_v33 = vpop.eup %2652 }
0x1c70   :  { %v1626_v36 = vmul.f32 %v2653_v33, %v1535_v41 }
0x1cd3   :  { %v1629_v34 = vpop.permute.xlu0 %1628 }
0x1cd4   :  { %v1631_v35 = vmul.f32 %v2653_v33, %v1629_v34 }
0x1cd6   :  { %1633 = vrot.lane.b32.xlu1 %v1631_v35, %s2692_s19  ;;  %v1218_v35 = vadd.f32 %v3035_v63, %v3008_v10  ;;  %v2130_v10 = vld [vmem:[%s3124_s7] ss:$0 sm:$0xff] }
0x1d48   :  { %v1634_v38 = vpop.permute.xlu1 %1633 }
0x1d49   :  { %v1636_v39 = vadd.f32 %v1634_v38, %v1626_v36 }
0x1d4b   :  { %2654 = vtanh.f32 %v1636_v39 }
0x1d55   :  { %v2655_v40 = vpop.eup %2654 }
0x1d56   :  { %1639 = vrot.lane.b32.xlu0 %v2655_v40, %s2691_s16 }
0x1dc8   :  { %v1640_v44 = vpop.permute.xlu0 %1639 }
0x1dc9   :  { %v1642_v2 = vmul.f32 %v2653_v33, %v1640_v44 }
0x1dcb   :  { %1645 = vrot.lane.b32.xlu1 %v1642_v2, %s2692_s19 }
0x1e3d   :  { %v1646_v45 = vpop.permute.xlu1 %1645 }
0x1e3e   :  { %2411 = vmatmul.mubr.msk.f32.vlgmr.msra.gmra.mrb[24].mxu0 %vm202_vm2, %v1646_v45 }
0x1e3f   :  { %2544 = vmatpush3.bf16.msra.mxu0 %v2965_v55  ;;  %2432 = vmatprep.mubr.msk.f32.mxu0 %vm2689_vm1, %v2690_v4 }
0x1e40   :  { %2545 = vmatprep.subr.bf16.mxu0 %v2688_v0 }
0x1e43   :  { %2547 = vmatpush3.bf16.msra.mxu0 %v2975_v58 }
0x1f11   :  { %v1715_v47 = vpop.f32.mrb[24].mxu0 }
0x1f12   :  { %v1719_v48 = vadd.f32 %v1715_v47, %v1203_v46  ;;  %v2412_v49 = vpop.f32.mrb[25].mxu0 }
0x1f14   :  { %2656 = vtanh.f32 %v1719_v48  ;;  %v2123_v51 = vmul.f32 -1.442695, %v1719_v48 }
0x1f16   :  { %2658 = vpow2.f32 %v2123_v51 }
0x1f1e   :  { %v2657_v50 = vpop.eup %2656 }
0x1f1f   :  { %1729 = vrot.lane.b32.xlu0 %v2657_v50, %s2691_s16 }
0x1f20   :  { %v2659_v52 = vpop.eup %2658 }
0x1f21   :  { %v1723_v53 = vadd.f32 1.0, %v2659_v52  ;;  %v16_v52 = vstv %s3125_s8 }
0x1f22   :  { %17 = vst [vmem:[#allocation4] sm:$0x1] %v16_v52 }
0x1f23   :  { %2660 = vrcp.f32 %v1723_v53 }
0x1f2d   :  { %v2661_v37 = vpop.eup %2660 }
0x1f2e   :  { %v1727_v57 = vmul.f32 %v2661_v37, %v1636_v39 }
0x1f91   :  { %v1730_v54 = vpop.permute.xlu0 %1729 }
0x1f92   :  { %v1732_v56 = vmul.f32 %v2661_v37, %v1730_v54 }
0x1f94   :  { %1734 = vrot.lane.b32.xlu1 %v1732_v56, %s2692_s19 }
0x2006   :  { %v1735_v59 = vpop.permute.xlu1 %1734 }
0x2007   :  { %v1737_v43 = vadd.f32 %v1735_v59, %v1727_v57 }
0x2009   :  { %2662 = vtanh.f32 %v1737_v43 }
0x2013   :  { %v2663_v60 = vpop.eup %2662 }
0x2014   :  { %1740 = vrot.lane.b32.xlu0 %v2663_v60, %s2691_s16 }
0x2086   :  { %v1741_v61 = vpop.permute.xlu0 %1740 }
0x2087   :  { %v1743_v3 = vmul.f32 %v2661_v37, %v1741_v61 }
0x2089   :  { %1746 = vrot.lane.b32.xlu1 %v1743_v3, %s2692_s19 }
0x20fb   :  { %v1747_v6 = vpop.permute.xlu1 %1746 }
0x20fc   :  { %2422 = vmatmul.mubr.msk.f32.vlgmr.msra.gmra.mrb[16].mxu1 %vm202_vm2, %v1747_v6 }
0x20fd   :  { %2550 = vmatpush3.bf16.msra.mxu1 %v2965_v55  ;;  %2443 = vmatprep.mubr.msk.f32.mxu1 %vm2689_vm1, %v2690_v4 }
0x20fe   :  { %2551 = vmatprep.subr.bf16.mxu1 %v2688_v0 }
0x2101   :  { %2553 = vmatpush3.bf16.msra.mxu1 %v2975_v58 }
0x21cf   :  { %v1816_v8 = vpop.f32.mrb[16].mxu1 }
0x21d0   :  { %v1820_v9 = vadd.f32 %v1816_v8, %v1208_v7  ;;  %v2423_v11 = vpop.f32.mrb[17].mxu1 }
0x21d2   :  { %2664 = vtanh.f32 %v1820_v9  ;;  %v2125_v12 = vmul.f32 -1.442695, %v1820_v9 }
0x21d4   :  { %2666 = vpow2.f32 %v2125_v12 }
0x21dc   :  { %v2665_v13 = vpop.eup %2664 }
0x21dd   :  { %1830 = vrot.lane.b32.xlu0 %v2665_v13, %s2691_s16 }
0x21de   :  { %v2667_v55 = vpop.eup %2666 }
0x21df   :  { %v1824_v15 = vadd.f32 1.0, %v2667_v55 }
0x21e1   :  { %2668 = vrcp.f32 %v1824_v15 }
0x21eb   :  { %v2669_v4 = vpop.eup %2668 }
0x21ec   :  { %v1828_v58 = vmul.f32 %v2669_v4, %v1737_v43  ;;  %v2131_v43 = vld [vmem:[#allocation4] ss:$0 sm:$0xff] }
0x224f   :  { %v1831_v16 = vpop.permute.xlu0 %1830 }
0x2250   :  { %v1833_v0 = vmul.f32 %v2669_v4, %v1831_v16 }
0x2252   :  { %1835 = vrot.lane.b32.xlu1 %v1833_v0, %s2692_s19 }
0x22c4   :  { %v1836_v62 = vpop.permute.xlu1 %1835 }
0x22c5   :  { %v1838_v42 = vadd.f32 %v1836_v62, %v1828_v58 }
0x22c7   :  { %2670 = vtanh.f32 %v1838_v42 }
0x22d1   :  { %v2671_v14 = vpop.eup %2670 }
0x22d2   :  { %1841 = vrot.lane.b32.xlu0 %v2671_v14, %s2691_s16 }
0x2344   :  { %v1842_v1 = vpop.permute.xlu0 %1841 }
0x2345   :  { %v1844_v17 = vmul.f32 %v2669_v4, %v1842_v1 }
0x2347   :  { %1847 = vrot.lane.b32.xlu1 %v1844_v17, %s2692_s19 }
0x23b9   :  { %v1848_v18 = vpop.permute.xlu1 %1847 }
0x23ba   :  { %2433 = vmatmul.mubr.msk.f32.vlgmr.msra.gmra.mrb[26].mxu0 %vm202_vm2, %v1848_v18 }
0x248d   :  { %v1917_v20 = vpop.f32.mrb[26].mxu0 }
0x248e   :  { %v1921_v41 = vadd.f32 %v1917_v20, %v1213_v19  ;;  %v2434_v21 = vpop.f32.mrb[27].mxu0 }
0x2490   :  { %2672 = vtanh.f32 %v1921_v41  ;;  %v2127_v23 = vmul.f32 -1.442695, %v1921_v41 }
0x2492   :  { %2674 = vpow2.f32 %v2127_v23 }
0x249a   :  { %v2673_v22 = vpop.eup %2672 }
0x249b   :  { %1931 = vrot.lane.b32.xlu0 %v2673_v22, %s2691_s16 }
0x249c   :  { %v2675_v24 = vpop.eup %2674 }
0x249d   :  { %v1925_v25 = vadd.f32 1.0, %v2675_v24 }
0x249f   :  { %2676 = vrcp.f32 %v1925_v25 }
0x24a9   :  { %v2677_v26 = vpop.eup %2676 }
0x24aa   :  { %v1929_v29 = vmul.f32 %v2677_v26, %v1838_v42 }
0x250d   :  { %v1932_v27 = vpop.permute.xlu0 %1931 }
0x250e   :  { %v1934_v28 = vmul.f32 %v2677_v26, %v1932_v27 }
0x2510   :  { %1936 = vrot.lane.b32.xlu1 %v1934_v28, %s2692_s19 }
0x2582   :  { %v1937_v30 = vpop.permute.xlu1 %1936 }
0x2583   :  { %v1939_v5 = vadd.f32 %v1937_v30, %v1929_v29 }
0x2585   :  { %2678 = vtanh.f32 %v1939_v5 }
0x258f   :  { %v2679_v31 = vpop.eup %2678 }
0x2590   :  { %1942 = vrot.lane.b32.xlu0 %v2679_v31, %s2691_s16 }
0x2602   :  { %v1943_v32 = vpop.permute.xlu0 %1942 }
0x2603   :  { %v1945_v33 = vmul.f32 %v2677_v26, %v1943_v32 }
0x2605   :  { %1948 = vrot.lane.b32.xlu1 %v1945_v33, %s2692_s19 }
0x2677   :  { %v1949_v34 = vpop.permute.xlu1 %1948 }
0x2678   :  { %2444 = vmatmul.mubr.msk.f32.vlgmr.msra.gmra.mrb[18].mxu1 %vm202_vm2, %v1949_v34 }
0x274b   :  { %v2018_v36 = vpop.f32.mrb[18].mxu1 }
0x274c   :  { %v2022_v38 = vadd.f32 %v2018_v36, %v1218_v35  ;;  %v2445_v39 = vpop.f32.mrb[19].mxu1 }
0x274e   :  { %2680 = vtanh.f32 %v2022_v38  ;;  %v2129_v44 = vmul.f32 -1.442695, %v2022_v38 }
0x2750   :  { %2682 = vpow2.f32 %v2129_v44 }
0x2758   :  { %v2681_v40 = vpop.eup %2680 }
0x2759   :  { %2032 = vrot.lane.b32.xlu0 %v2681_v40, %s2691_s16 }
0x275a   :  { %v2683_v2 = vpop.eup %2682 }
0x275b   :  { %v2026_v45 = vadd.f32 1.0, %v2683_v2 }
0x275d   :  { %2684 = vrcp.f32 %v2026_v45 }
0x2767   :  { %v2685_v46 = vpop.eup %2684 }
0x2768   :  { %v2030_v63 = vmul.f32 %v2685_v46, %v1939_v5 }
0x27cb   :  { %v2033_v47 = vpop.permute.xlu0 %2032 }
0x27cc   :  { %v2035_v48 = vmul.f32 %v2685_v46, %v2033_v47 }
0x27ce   :  { %2037 = vrot.lane.b32.xlu1 %v2035_v48, %s2692_s19 }
0x27d2   :  { %2053 = vrot.lane.b32.xlu1 %v2130_v10, %s2693_s28 }
0x2840   :  { %v2038_v49 = vpop.permute.xlu1 %2037 }
0x2841   :  { %v2040_v50 = vadd.f32 %v2038_v49, %v2030_v63 }
0x2843   :  { %2686 = vtanh.f32 %v2040_v50 }
0x2844   :  { %v2054_v37 = vpop.permute.xlu1 %2053 }
0x284d   :  { %v2687_v51 = vpop.eup %2686 }
0x284e   :  { %2043 = vrot.lane.b32.xlu0 %v2687_v51, %s2691_s16 }
0x28c0   :  { %v2044_v53 = vpop.permute.xlu0 %2043 }
0x28c1   :  { %v2046_v54 = vmul.f32 %v2685_v46, %v2044_v53 }
0x28c3   :  { %v2056_v56 = vmul.f32 %v2054_v37, %v2046_v54 }
0x28c5   :  { %2058 = vrot.lane.b32.xlu0 %v2056_v56, %s2692_s19 }
0x2937   :  { %v2059_v57 = vpop.permute.xlu0 %2058 }
0x2938   :  { %v2061_v59 = vsel %vm202_vm2, %v2059_v57, 0.0 }
0x2939   :  { %2062 = vadd.xlane.f32.xlu1 %v2061_v59 }
0x29c6   :  { %v2063_v60 = vpop.xlane.xlu1 %2062 }
0x29c7   :  { %v2071_v61 = vadd.f32 %v2131_v43, %v2063_v60 }
0x29c9   :  { %2073 = vst.msk [vmem:[%s3126_s11] sm:$0xff] %vm2072_vm3, %v2071_v61 }

</bundles_post_ra>
